<compile_context>
chip_gen: v6e
topology: v6e:2x2x1
jax: 0.10.0
libtpu: 0.0.40
codegen_flags: <defaults>
</compile_context>

<pallas_src>
import functools

import jax
import jax.numpy as jnp
from jax.experimental import pallas as pl
from jax.experimental.pallas import tpu as pltpu


def discriminator_kernel(x_ref, w1_ref, b1_ref, w2_ref, b2_ref, o_ref, acc_ref):
    k = pl.program_id(1)

    # ---- init accumulator at the first K chunk of this batch tile ----
    @pl.when(k == 0)
    def _():
        acc_ref[...] = jnp.zeros_like(acc_ref)

    # ---- fc1 partial product: x[:, k-chunk] @ W1[k-chunk, :] on the MXU (f32 acc) ----
    acc_ref[...] += jnp.dot(
        x_ref[...], w1_ref[...], preferred_element_type=jnp.float32
    )

    # ---- epilogue on the last K chunk: bias, LeakyReLU, fc2 reduce, sigmoid ----
    @pl.when(k == pl.num_programs(1) - 1)
    def _():
        h = acc_ref[...] + b1_ref[...]                        # (tb, H) + (1, H)
        h = jnp.where(h > 0, h, 0.2 * h)                      # LeakyReLU(0.2)
        # fc2 has out_features == 1: VPU mul + cross-lane reduce (XLU) instead of
        # an N=1 MXU matmul that would light up a single MXU column.
        z = jnp.sum(h * w2_ref[...], axis=-1, keepdims=True)  # (tb, 1)
        z = z + b2_ref[0]                                     # scalar bias from SMEM
        o_ref[...] = jax.nn.sigmoid(z).astype(o_ref.dtype)    # EUP exp + reciprocal


def discriminator_forward(x, w1, b1, w2, b2, *, tb=512, tk=512):
    """x: (B, D); w1: (D, 128); b1: (128,)/(1,128); w2: (128, 1); b2: (1,)/(1,1).

    x / w1 may be bf16 (supplied by the caller); accumulation and the epilogue
    stay in f32.
    """
    B, D = x.shape
    H = w1.shape[1]

    tb = min(tb, B)
    tk = D if D <= tk else tk
    # TODO(synk): mask the ragged K tail instead of requiring divisibility.
    assert D % tk == 0, f"input_dim={D} must be a multiple of tk={tk}"

    # (1, H) lane-resident row for the VPU-mul + lane-reduce fc2 path; f32 epilogue.
    b1_row = jnp.asarray(b1, jnp.float32).reshape(1, H)
    w2_row = jnp.asarray(w2, jnp.float32).reshape(1, H)
    b2_s = jnp.asarray(b2, jnp.float32).reshape(1)            # 1-D SMEM scalar

    grid = (pl.cdiv(B, tb), D // tk)

    # Explicit scoped-VMEM budget: double-buffered x / W1 tiles + resident small
    # operands + f32 accumulator + output, with ~1.5x headroom.  Keeps v5e (16 MiB
    # scoped default) from failing on big tiles; capped under v7x's 64 MiB physical.
    vmem_bytes = (
        2 * tb * tk * x.dtype.itemsize        # x tile, double buffered
        + 2 * tk * H * w1.dtype.itemsize      # W1 tile, double buffered
        + 2 * H * 4                           # b1
        + 2 * H * 4                           # w2 row
        + tb * H * 4                          # accumulator scratch
        + 2 * tb * 4                          # output tile, double buffered
    )
    vmem_limit = int(min(max(vmem_bytes * 3 // 2, 32 << 20), 64 << 20))

    return pl.pallas_call(
        discriminator_kernel,
        out_shape=jax.ShapeDtypeStruct((B, 1), jnp.float32),
        grid_spec=pltpu.PrefetchScalarGridSpec(
            num_scalar_prefetch=0,
            grid=grid,
            in_specs=[
                pl.BlockSpec((tb, tk), lambda i, k: (i, k)),   # x batch/K tile
                pl.BlockSpec((tk, H), lambda i, k: (k, 0)),    # W1 K tile
                pl.BlockSpec((1, H), lambda i, k: (0, 0)),     # b1 (resident)
                pl.BlockSpec((1, H), lambda i, k: (0, 0)),     # W2 row (resident)
                pl.BlockSpec(memory_space=pltpu.MemorySpace.SMEM),  # b2 scalar
            ],
            out_specs=pl.BlockSpec((tb, 1), lambda i, k: (i, 0)),
            scratch_shapes=[pltpu.VMEM((tb, H), jnp.float32)],
        ),
        compiler_params=pltpu.CompilerParams(
            # batch tiles shard across TCs (v7x); K is a reduction -> arbitrary.
            dimension_semantics=("parallel", "arbitrary"),
            vmem_limit_bytes=vmem_limit,
        ),
    )(x, w1, b1_row, w2_row, b2_s)


def reference_forward(x, w1, b1, w2, b2):
    hi = jax.lax.Precision.HIGHEST
    h = jnp.dot(x.astype(jnp.float32), w1.astype(jnp.float32), precision=hi)
    h = h + jnp.asarray(b1, jnp.float32).reshape(1, -1)
    h = jnp.where(h > 0, h, 0.2 * h)
    z = jnp.dot(h, jnp.asarray(w2, jnp.float32), precision=hi)
    z = z + jnp.asarray(b2, jnp.float32).reshape(1, 1)
    return jax.nn.sigmoid(z)


if __name__ == "__main__":
    key = jax.random.PRNGKey(0)
    k_x, k_w1, k_b1, k_w2, k_b2, k_x2, k_w1b = jax.random.split(key, 7)

    HIDDEN = 128  # fc1 out features (fixed by the module)

    # ---- Case 1: small input_dim, default tb=512 -> 4 batch grid steps, 1 K step ----
    B, INPUT_DIM = 2048, 64
    x = jax.random.normal(k_x, (B, INPUT_DIM), dtype=jnp.float32)
    w1 = 0.1 * jax.random.normal(k_w1, (INPUT_DIM, HIDDEN), dtype=jnp.float32)
    b1 = 0.1 * jax.random.normal(k_b1, (HIDDEN,), dtype=jnp.float32)
    w2 = 0.1 * jax.random.normal(k_w2, (HIDDEN, 1), dtype=jnp.float32)
    b2 = 0.1 * jax.random.normal(k_b2, (1,), dtype=jnp.float32)

    fwd = jax.jit(functools.partial(discriminator_forward, tb=512, tk=512))
    out = jax.block_until_ready(fwd(x, w1, b1, w2, b2))
    ref = reference_forward(x, w1, b1, w2, b2)
    assert out.shape == (B, 1), out.shape
    assert jnp.allclose(out, ref, atol=1e-4, rtol=1e-4), (
        f"case1 mismatch: max abs err = {jnp.max(jnp.abs(out - ref))}")

    # ---- Case 2: larger input_dim exercising the K-tiled accumulator path ----
    B2, INPUT_DIM2 = 512, 1024
    x2 = jax.random.normal(k_x2, (B2, INPUT_DIM2), dtype=jnp.float32)
    w1b = 0.05 * jax.random.normal(k_w1b, (INPUT_DIM2, HIDDEN), dtype=jnp.float32)

    fwd2 = jax.jit(functools.partial(discriminator_forward, tb=256, tk=512))
    out2 = jax.block_until_ready(fwd2(x2, w1b, b1, w2, b2))   # grid (2, 2)
    ref2 = reference_forward(x2, w1b, b1, w2, b2)
    assert out2.shape == (B2, 1), out2.shape
    assert jnp.allclose(out2, ref2, atol=1e-4, rtol=1e-4), (
        f"case2 mismatch: max abs err = {jnp.max(jnp.abs(out2 - ref2))}")

    print("KERNEL_OK")
</pallas_src>

<mosaic_0001>
module attributes {stable_mosaic.version = 11 : i64} {
  func.func @discriminator_kernel(%arg0: i32, %arg1: i32, %arg2: memref<512x64xf32, #tpu.memory_space<vmem>>, %arg3: memref<64x128xf32, #tpu.memory_space<vmem>>, %arg4: memref<1x128xf32, #tpu.memory_space<vmem>>, %arg5: memref<1x128xf32, #tpu.memory_space<vmem>>, %arg6: memref<1xf32, #tpu.memory_space<smem>>, %arg7: memref<512x1xf32, #tpu.memory_space<vmem>>, %arg8: memref<512x128xf32, #tpu.memory_space<vmem>>) attributes {dimension_semantics = [#tpu.dimension_semantics<parallel>, #tpu.dimension_semantics<arbitrary>], iteration_bounds = array<i64: 4, 1>, scalar_prefetch = 0 : i64, scratch_operands = 1 : i64, tpu.core_type = #tpu.core_type<tc>, window_params = [{transform_indices = @transform_0, window_bounds = array<i64: 512, 64>}, {transform_indices = @transform_1, window_bounds = array<i64: 64, 128>}, {pipeline_mode = #tpu.pipeline_mode<synchronous>, transform_indices = @transform_2, window_bounds = array<i64: 1, 128>}, {pipeline_mode = #tpu.pipeline_mode<synchronous>, transform_indices = @transform_3, window_bounds = array<i64: 1, 128>}, {transform_indices = @transform_4, window_bounds = array<i64: 1>}, {transform_indices = @transform_5, window_bounds = array<i64: 512, 1>}]} {
    %c0_i32 = arith.constant 0 : i32
    %0 = arith.cmpi eq, %arg1, %c0_i32 : i32
    %1 = arith.extui %0 : i1 to i32
    %c0_i32_0 = arith.constant 0 : i32
    %2 = arith.cmpi ne, %1, %c0_i32_0 : i32
    scf.if %2 {
      %cst_10 = arith.constant 0.000000e+00 : f32
      %12 = vector.broadcast %cst_10 : f32 to vector<512x128xf32>
      %c0_11 = arith.constant 0 : index
      %c0_12 = arith.constant 0 : index
      %13 = vector.load %arg8[%c0_11, %c0_12] : memref<512x128xf32, #tpu.memory_space<vmem>>, vector<512x128xf32>
      tpu.vector_store %arg8[%c0_11, %c0_12], %12 {strides = array<i32>} : memref<512x128xf32, #tpu.memory_space<vmem>>, vector<512x128xf32>,
    } else {
    }
    %c0 = arith.constant 0 : index
    %c0_1 = arith.constant 0 : index
    %3 = vector.load %arg8[%c0, %c0_1] : memref<512x128xf32, #tpu.memory_space<vmem>>, vector<512x128xf32>
    %c0_2 = arith.constant 0 : index
    %c0_3 = arith.constant 0 : index
    %4 = vector.load %arg2[%c0_2, %c0_3] : memref<512x64xf32, #tpu.memory_space<vmem>>, vector<512x64xf32>
    %c0_4 = arith.constant 0 : index
    %c0_5 = arith.constant 0 : index
    %5 = vector.load %arg3[%c0_4, %c0_5] : memref<64x128xf32, #tpu.memory_space<vmem>>, vector<64x128xf32>
    %cst = arith.constant dense<0.000000e+00> : vector<512x128xf32>
    %6 = tpu.matmul %4, %5, %cst {dimension_numbers = #tpu.dot_dimension_numbers<[1], [0], [0], [1], [0, 0, 1, 1], [], []>} : vector<512x64xf32>, vector<64x128xf32>, vector<512x128xf32> -> vector<512x128xf32>
    %7 = arith.addf %3, %6 : vector<512x128xf32>
    %c0_6 = arith.constant 0 : index
    %c0_7 = arith.constant 0 : index
    %8 = vector.load %arg8[%c0_6, %c0_7] : memref<512x128xf32, #tpu.memory_space<vmem>>, vector<512x128xf32>
    tpu.vector_store %arg8[%c0_6, %c0_7], %7 {strides = array<i32>} : memref<512x128xf32, #tpu.memory_space<vmem>>, vector<512x128xf32>,
    %c0_i32_8 = arith.constant 0 : i32
    %9 = arith.cmpi eq, %arg1, %c0_i32_8 : i32
    %10 = arith.extui %9 : i1 to i32
    %c0_i32_9 = arith.constant 0 : i32
    %11 = arith.cmpi ne, %10, %c0_i32_9 : i32
    scf.if %11 {
      %c0_10 = arith.constant 0 : index
      %c0_11 = arith.constant 0 : index
      %12 = vector.load %arg8[%c0_10, %c0_11] : memref<512x128xf32, #tpu.memory_space<vmem>>, vector<512x128xf32>
      %c0_12 = arith.constant 0 : index
      %c0_13 = arith.constant 0 : index
      %13 = vector.load %arg4[%c0_12, %c0_13] : memref<1x128xf32, #tpu.memory_space<vmem>>, vector<1x128xf32>
      %14 = vector.broadcast %13 : vector<1x128xf32> to vector<512x128xf32>
      %15 = arith.addf %12, %14 : vector<512x128xf32>
      %cst_14 = arith.constant 0.000000e+00 : f32
      %16 = vector.broadcast %cst_14 : f32 to vector<512x128xf32>
      %17 = arith.cmpf ogt, %15, %16 : vector<512x128xf32>
      %cst_15 = arith.constant 2.000000e-01 : f32
      %18 = vector.broadcast %cst_15 : f32 to vector<512x128xf32>
      %19 = arith.mulf %18, %15 : vector<512x128xf32>
      %20 = arith.select %17, %15, %19 : vector<512x128xi1>, vector<512x128xf32>
      %c0_16 = arith.constant 0 : index
      %c0_17 = arith.constant 0 : index
      %21 = vector.load %arg5[%c0_16, %c0_17] : memref<1x128xf32, #tpu.memory_space<vmem>>, vector<1x128xf32>
      %22 = vector.broadcast %21 : vector<1x128xf32> to vector<512x128xf32>
      %23 = arith.mulf %20, %22 : vector<512x128xf32>
      %cst_18 = arith.constant dense<0.000000e+00> : vector<512xf32>
      %24 = vector.multi_reduction <add>, %23, %cst_18 [1] : vector<512x128xf32> to vector<512xf32>
      %25 = vector.shape_cast %24 : vector<512xf32> to vector<512x1xf32>
      %c0_19 = arith.constant 0 : index
      %26 = memref.load %arg6[%c0_19] : memref<1xf32, #tpu.memory_space<smem>>
      %27 = vector.broadcast %26 : f32 to vector<512x1xf32>
      %28 = arith.addf %25, %27 : vector<512x1xf32>
      %29 = arith.negf %28 : vector<512x1xf32>
      %30 = math.exp %29 : vector<512x1xf32>
      %cst_20 = arith.constant 1.000000e+00 : f32
      %31 = vector.broadcast %cst_20 : f32 to vector<512x1xf32>
      %32 = arith.addf %31, %30 : vector<512x1xf32>
      %33 = arith.divf %31, %32 : vector<512x1xf32>
      %c0_21 = arith.constant 0 : index
      %c0_22 = arith.constant 0 : index
      %34 = vector.load %arg7[%c0_21, %c0_22] : memref<512x1xf32, #tpu.memory_space<vmem>>, vector<512x1xf32>
      tpu.vector_store %arg7[%c0_21, %c0_22], %33 {strides = array<i32>} : memref<512x1xf32, #tpu.memory_space<vmem>>, vector<512x1xf32>,
    } else {
    }
    return
  }
  func.func @transform_0(%arg0: i32, %arg1: i32) -> (i32, i32) {
    %c0_i32 = arith.constant 0 : i32
    return %arg0, %arg1 : i32, i32
  }
  func.func @transform_1(%arg0: i32, %arg1: i32) -> (i32, i32) {
    %c0_i32 = arith.constant 0 : i32
    %c0_i32_0 = arith.constant 0 : i32
    return %arg1, %c0_i32 : i32, i32
  }
  func.func @transform_2(%arg0: i32, %arg1: i32) -> (i32, i32) {
    %c0_i32 = arith.constant 0 : i32
    %c0_i32_0 = arith.constant 0 : i32
    %c0_i32_1 = arith.constant 0 : i32
    return %c0_i32, %c0_i32_0 : i32, i32
  }
  func.func @transform_3(%arg0: i32, %arg1: i32) -> (i32, i32) {
    %c0_i32 = arith.constant 0 : i32
    %c0_i32_0 = arith.constant 0 : i32
    %c0_i32_1 = arith.constant 0 : i32
    return %c0_i32, %c0_i32_0 : i32, i32
  }
  func.func @transform_4(%arg0: i32, %arg1: i32) -> i32 {
    %c0_i32 = arith.constant 0 : i32
    %c0_i32_0 = arith.constant 0 : i32
    return %c0_i32 : i32
  }
  func.func @transform_5(%arg0: i32, %arg1: i32) -> (i32, i32) {
    %c0_i32 = arith.constant 0 : i32
    %c0_i32_0 = arith.constant 0 : i32
    return %arg0, %c0_i32 : i32, i32
  }
}

</mosaic_0001>

<bundles_post_ra>
// kernel: discriminator_forward.1
= control target key start
LH: loop header
LB: loop body
LE: loop exit
PB: predicated region body
PF: predicated region fallthrough
CT: control target
= control target key end

     0   :  { %s2990_s20 = smov 0   ;;  %s2992_s21 = smov 0   ;;  %s3518_s0 = inlined_call_operand.vmem [shape: f32[2048,64], index: 0, kind: input, shape index: {}]   ;;  %s3519_s1 = inlined_call_operand.vmem [shape: f32[64,128], index: 1, kind: input, shape index: {}]   ;;  %s3520_s2 = inlined_call_operand.vmem [shape: f32[1,128], index: 2, kind: input, shape index: {}]   ;;  %s3521_s3 = inlined_call_operand.vmem [shape: f32[1,128], index: 3, kind: input, shape index: {}]   ;;  %s3522_s4 = inlined_call_operand.<no memory space> [shape: f32[1], index: 4, kind: input, shape index: {}]   ;;  %s3523_s5 = inlined_call_operand.vmem [shape: f32[2048,1], index: 5, kind: output, shape index: {}]  }
   0x1   :  { %10 = sst [smem:[#allocation3]] %s3522_s4  ;;  %s2994_s22 = smov 0  }
   0x2 LB: > { %s28_s4 = sadd.s32 1, %s2951_s21  ;;  %p2316_p0 = scmp.ge.s32.totalorder %s2955_s22, 1  ;;  %s2955_s22 = sphi %s2994_s22, %s16_s22   ;;  %s2951_s21 = sphi %s2992_s21, %s3525_s21   ;;  %s2947_s20 = sphi %s2990_s20, %s3524_s20  }
   0x3   : > { %p30_p1 = scmp.ge.s32.totalorder %s28_s4, 4  ;;  %p217_p2 = scmp.lt.s32.totalorder %s2955_s22, 5 }
   0x5   : > { %s3527_s4 = smov (%p30_p1, %s28_s4), 0  ;;  %p218_p3 = pnand %p2316_p0, %p217_p2 }
   0x6   : > { %s2317_s27 = sshll.u32 (!%p218_p3), %s2947_s20, 6  ;;  %s1713_s25 = sld [smem:[#allocation3]] (!%p218_p3) }
   0x7   : > { %221 = sbr.rel (%p218_p3) target bundleno = 531 (0x213), region = 40  ;;  %p254_p4 = scmp.lt.s32.totalorder (!%p218_p3), %s2317_s27, 255 }
   0xc   : > { %v477_v0 = vld [vmem:[%s3519_s1 + $0x38] sm:$0xff]  ;;  %v476_v1 = vld [vmem:[%s3519_s1 + $0x30] sm:$0xff]  ;;  %v475_v2 = vld [vmem:[%s3519_s1 + $0x28] sm:$0xff]  ;;  %s3529_s27 = smov (!%p254_p4, %s2317_s27), 255  ;;  %vm478_vm0 = vcmask 523264  }
   0xd   : > { %2525 = vmatprep.subr.mxu0 %v477_v0  ;;  %2637 = vmatprep.subr.mxu1 %v477_v0  ;;  %v474_v3 = vld [vmem:[%s3519_s1 + $0x20] sm:$0xff]  ;;  %v473_v4 = vld [vmem:[%s3519_s1 + $0x18] sm:$0xff]  ;;  %v472_v5 = vld [vmem:[%s3519_s1 + $0x10] sm:$0xff]  ;;  %s2318_s11 = sshll.u32 %s3529_s27, 3 }
   0xe   : > { %2526 = vmatpush3.msra.mxu0 %v477_v0  ;;  %2645 = vmatpush3.msra.mxu1 %v477_v0  ;;  %v471_v6 = vld [vmem:[%s3519_s1 + $0x8] sm:$0xff]  ;;  %s3037_s16 = scalar_lea.vmem %s3518_s0, %s2318_s11  ;;  %v470_v7 = vld [vmem:[%s3519_s1] sm:$0xff]  ;;  %s3331_s29 = scalar_lea.vmem %s3523_s5, %s2318_s11 }
   0xf   : > { %2527 = vmatprep.subr.mxu0 %v476_v1  ;;  %2638 = vmatprep.subr.mxu1 %v476_v1  ;;  %v406_v8 = vld [vmem:[%s3037_s16] sm:$0xff]  ;;  %v407_v10 = vld [vmem:[%s3037_s16 + $0x8] sm:$0xff]  ;;  %v408_v12 = vld [vmem:[%s3037_s16 + $0x10] sm:$0xff] }
  0x10   : > { %2528 = vmatpush3.msra.mxu0 %v476_v1  ;;  %2646 = vmatpush3.msra.mxu1 %v476_v1  ;;  %v438_v9 = vld [vmem:[%s3037_s16 + $0x100] sm:$0xff]  ;;  %v439_v11 = vld [vmem:[%s3037_s16 + $0x108] sm:$0xff]  ;;  %v440_v13 = vld [vmem:[%s3037_s16 + $0x110] sm:$0xff] }
  0x11   : > { %2529 = vmatprep.subr.mxu0 %v475_v2  ;;  %2639 = vmatprep.subr.mxu1 %v475_v2  ;;  %v409_v14 = vld [vmem:[%s3037_s16 + $0x18] sm:$0xff]  ;;  %v410_v16 = vld [vmem:[%s3037_s16 + $0x20] sm:$0xff]  ;;  %v411_v18 = vld [vmem:[%s3037_s16 + $0x28] sm:$0xff] }
  0x12   : > { %2530 = vmatpush3.msra.mxu0 %v475_v2  ;;  %2647 = vmatpush3.msra.mxu1 %v475_v2  ;;  %v441_v15 = vld [vmem:[%s3037_s16 + $0x118] sm:$0xff]  ;;  %v442_v17 = vld [vmem:[%s3037_s16 + $0x120] sm:$0xff]  ;;  %v443_v19 = vld [vmem:[%s3037_s16 + $0x128] sm:$0xff] }
  0x13   : > { %2531 = vmatprep.subr.mxu0 %v474_v3  ;;  %2640 = vmatprep.subr.mxu1 %v474_v3  ;;  %v412_v20 = vld [vmem:[%s3037_s16 + $0x30] sm:$0xff]  ;;  %v413_v22 = vld [vmem:[%s3037_s16 + $0x38] sm:$0xff]  ;;  %v414_v24 = vld [vmem:[%s3037_s16 + $0x40] sm:$0xff] }
  0x14   : > { %2532 = vmatpush3.msra.mxu0 %v474_v3  ;;  %2648 = vmatpush3.msra.mxu1 %v474_v3  ;;  %v444_v21 = vld [vmem:[%s3037_s16 + $0x130] sm:$0xff]  ;;  %v445_v23 = vld [vmem:[%s3037_s16 + $0x138] sm:$0xff]  ;;  %v446_v25 = vld [vmem:[%s3037_s16 + $0x140] sm:$0xff] }
  0x15   : > { %2533 = vmatprep.subr.mxu0 %v473_v4  ;;  %2641 = vmatprep.subr.mxu1 %v473_v4  ;;  %v415_v26 = vld [vmem:[%s3037_s16 + $0x48] sm:$0xff]  ;;  %v416_v28 = vld [vmem:[%s3037_s16 + $0x50] sm:$0xff]  ;;  %v417_v30 = vld [vmem:[%s3037_s16 + $0x58] sm:$0xff] }
  0x16   : > { %2534 = vmatpush3.msra.mxu0 %v473_v4  ;;  %2649 = vmatpush3.msra.mxu1 %v473_v4  ;;  %v447_v27 = vld [vmem:[%s3037_s16 + $0x148] sm:$0xff]  ;;  %v448_v29 = vld [vmem:[%s3037_s16 + $0x150] sm:$0xff]  ;;  %v449_v31 = vld [vmem:[%s3037_s16 + $0x158] sm:$0xff] }
  0x17   : > { %2535 = vmatprep.subr.mxu0 %v472_v5  ;;  %2642 = vmatprep.subr.mxu1 %v472_v5  ;;  %v418_v32 = vld [vmem:[%s3037_s16 + $0x60] sm:$0xff]  ;;  %v419_v34 = vld [vmem:[%s3037_s16 + $0x68] sm:$0xff]  ;;  %v420_v36 = vld [vmem:[%s3037_s16 + $0x70] sm:$0xff] }
  0x18   : > { %2536 = vmatpush3.msra.mxu0 %v472_v5  ;;  %2650 = vmatpush3.msra.mxu1 %v472_v5  ;;  %v450_v33 = vld [vmem:[%s3037_s16 + $0x160] sm:$0xff]  ;;  %v451_v35 = vld [vmem:[%s3037_s16 + $0x168] sm:$0xff]  ;;  %v452_v37 = vld [vmem:[%s3037_s16 + $0x170] sm:$0xff] }
  0x19   : > { %2537 = vmatprep.subr.mxu0 %v471_v6  ;;  %2643 = vmatprep.subr.mxu1 %v471_v6  ;;  %v421_v38 = vld [vmem:[%s3037_s16 + $0x78] sm:$0xff]  ;;  %v422_v40 = vld [vmem:[%s3037_s16 + $0x80] sm:$0xff]  ;;  %v423_v42 = vld [vmem:[%s3037_s16 + $0x88] sm:$0xff] }
  0x1a   : > { %2538 = vmatpush3.msra.mxu0 %v471_v6  ;;  %2651 = vmatpush3.msra.mxu1 %v471_v6  ;;  %v453_v39 = vld [vmem:[%s3037_s16 + $0x178] sm:$0xff]  ;;  %v454_v41 = vld [vmem:[%s3037_s16 + $0x180] sm:$0xff]  ;;  %v455_v43 = vld [vmem:[%s3037_s16 + $0x188] sm:$0xff] }
  0x1b   : > { %2539 = vmatprep.subr.mxu0 %v470_v7  ;;  %2644 = vmatprep.subr.mxu1 %v470_v7  ;;  %v424_v44 = vld [vmem:[%s3037_s16 + $0x90] sm:$0xff]  ;;  %v425_v46 = vld [vmem:[%s3037_s16 + $0x98] sm:$0xff]  ;;  %v426_v48 = vld [vmem:[%s3037_s16 + $0xa0] sm:$0xff] }
  0x1c   : > { %2540 = vmatpush3.msra.mxu0 %v470_v7  ;;  %2652 = vmatpush3.msra.mxu1 %v470_v7  ;;  %v456_v45 = vld [vmem:[%s3037_s16 + $0x190] sm:$0xff]  ;;  %v457_v47 = vld [vmem:[%s3037_s16 + $0x198] sm:$0xff]  ;;  %v458_v49 = vld [vmem:[%s3037_s16 + $0x1a0] sm:$0xff] }
  0x1d   : > { %2541 = vmatprep.mubr.msk.f32.mxu0 %vm478_vm0, %v406_v8  ;;  %2589 = vmatprep.mubr.msk.f32.mxu1 %vm478_vm0, %v438_v9  ;;  %v427_v50 = vld [vmem:[%s3037_s16 + $0xa8] sm:$0xff]  ;;  %v428_v52 = vld [vmem:[%s3037_s16 + $0xb0] sm:$0xff]  ;;  %v429_v54 = vld [vmem:[%s3037_s16 + $0xb8] sm:$0xff] }
  0x1e   : > { %2542 = vmatmul.mubr.msk.f32.vlgmr.msra.gmra.mxu0 %vm478_vm0, %v407_v10  ;;  %2590 = vmatmul.mubr.msk.f32.vlgmr.msra.gmra.mxu1 %vm478_vm0, %v439_v11  ;;  %v459_v51 = vld [vmem:[%s3037_s16 + $0x1a8] sm:$0xff]  ;;  %v460_v53 = vld [vmem:[%s3037_s16 + $0x1b0] sm:$0xff]  ;;  %v461_v55 = vld [vmem:[%s3037_s16 + $0x1b8] sm:$0xff] }
  0x1f   : > { %2544 = vmatprep.mubr.msk.f32.mxu0 %vm478_vm0, %v408_v12  ;;  %2592 = vmatprep.mubr.msk.f32.mxu1 %vm478_vm0, %v440_v13  ;;  %v430_v56 = vld [vmem:[%s3037_s16 + $0xc0] sm:$0xff]  ;;  %v431_v58 = vld [vmem:[%s3037_s16 + $0xc8] sm:$0xff]  ;;  %v432_v60 = vld [vmem:[%s3037_s16 + $0xd0] sm:$0xff] }
  0x20   : > { %v462_v57 = vld [vmem:[%s3037_s16 + $0x1c0] sm:$0xff]  ;;  %v463_v59 = vld [vmem:[%s3037_s16 + $0x1c8] sm:$0xff]  ;;  %v464_v61 = vld [vmem:[%s3037_s16 + $0x1d0] sm:$0xff] }
  0x21   : > { %v433_v62 = vld [vmem:[%s3037_s16 + $0xd8] sm:$0xff]  ;;  %v434_v0 = vld [vmem:[%s3037_s16 + $0xe0] sm:$0xff]  ;;  %v435_v2 = vld [vmem:[%s3037_s16 + $0xe8] sm:$0xff] }
  0x22   : > { %2545 = vmatmul.mubr.msk.f32.gmra.mxu0 %vm478_vm0, %v409_v14  ;;  %2593 = vmatmul.mubr.msk.f32.gmra.mxu1 %vm478_vm0, %v441_v15  ;;  %v465_v63 = vld [vmem:[%s3037_s16 + $0x1d8] sm:$0xff]  ;;  %v466_v1 = vld [vmem:[%s3037_s16 + $0x1e0] sm:$0xff]  ;;  %v467_v3 = vld [vmem:[%s3037_s16 + $0x1e8] sm:$0xff] }
  0x23   : > { %2547 = vmatprep.mubr.msk.f32.mxu0 %vm478_vm0, %v410_v16  ;;  %2595 = vmatprep.mubr.msk.f32.mxu1 %vm478_vm0, %v442_v17  ;;  %v436_v4 = vld [vmem:[%s3037_s16 + $0xf0] sm:$0xff]  ;;  %v437_v6 = vld [vmem:[%s3037_s16 + $0xf8] sm:$0xff]  ;;  %v3173_v8 = vld [vmem:[%s3520_s2] ss:$0 sm:$0xff] }
  0x24   : > { %v468_v5 = vld [vmem:[%s3037_s16 + $0x1f0] sm:$0xff]  ;;  %v469_v7 = vld [vmem:[%s3037_s16 + $0x1f8] sm:$0xff] }
  0x26   : > { %2548 = vmatmul.mubr.msk.f32.gmra.mxu0 %vm478_vm0, %v411_v18  ;;  %2596 = vmatmul.mubr.msk.f32.gmra.mxu1 %vm478_vm0, %v443_v19 }
  0x27   : > { %2550 = vmatprep.mubr.msk.f32.mxu0 %vm478_vm0, %v412_v20  ;;  %2598 = vmatprep.mubr.msk.f32.mxu1 %vm478_vm0, %v444_v21 }
  0x2a   : > { %2551 = vmatmul.mubr.msk.f32.gmra.mxu0 %vm478_vm0, %v413_v22  ;;  %2599 = vmatmul.mubr.msk.f32.gmra.mxu1 %vm478_vm0, %v445_v23 }
  0x2b   : > { %2553 = vmatprep.mubr.msk.f32.mxu0 %vm478_vm0, %v414_v24  ;;  %2601 = vmatprep.mubr.msk.f32.mxu1 %vm478_vm0, %v446_v25  ;;  %v3184_v24 = vld [vmem:[%s3521_s3] ss:$0 sm:$0xff] }
  0x2e   : > { %2554 = vmatmul.mubr.msk.f32.gmra.mxu0 %vm478_vm0, %v415_v26  ;;  %2602 = vmatmul.mubr.msk.f32.gmra.mxu1 %vm478_vm0, %v447_v27 }
  0x2f   : > { %2556 = vmatprep.mubr.msk.f32.mxu0 %vm478_vm0, %v416_v28  ;;  %2604 = vmatprep.mubr.msk.f32.mxu1 %vm478_vm0, %v448_v29 }
  0x32   : > { %2557 = vmatmul.mubr.msk.f32.gmra.mxu0 %vm478_vm0, %v417_v30  ;;  %2605 = vmatmul.mubr.msk.f32.gmra.mxu1 %vm478_vm0, %v449_v31 }
  0x33   : > { %2559 = vmatprep.mubr.msk.f32.mxu0 %vm478_vm0, %v418_v32  ;;  %2607 = vmatprep.mubr.msk.f32.mxu1 %vm478_vm0, %v450_v33 }
  0x36   : > { %2560 = vmatmul.mubr.msk.f32.gmra.mxu0 %vm478_vm0, %v419_v34  ;;  %2608 = vmatmul.mubr.msk.f32.gmra.mxu1 %vm478_vm0, %v451_v35 }
  0x37   : > { %2562 = vmatprep.mubr.msk.f32.mxu0 %vm478_vm0, %v420_v36  ;;  %2610 = vmatprep.mubr.msk.f32.mxu1 %vm478_vm0, %v452_v37 }
  0x3a   : > { %2563 = vmatmul.mubr.msk.f32.gmra.mxu0 %vm478_vm0, %v421_v38  ;;  %2611 = vmatmul.mubr.msk.f32.gmra.mxu1 %vm478_vm0, %v453_v39 }
  0x3b   : > { %2565 = vmatprep.mubr.msk.f32.mxu0 %vm478_vm0, %v422_v40  ;;  %2613 = vmatprep.mubr.msk.f32.mxu1 %vm478_vm0, %v454_v41 }
  0x3e   : > { %2566 = vmatmul.mubr.msk.f32.gmra.mxu0 %vm478_vm0, %v423_v42  ;;  %2614 = vmatmul.mubr.msk.f32.gmra.mxu1 %vm478_vm0, %v455_v43 }
  0x3f   : > { %2568 = vmatprep.mubr.msk.f32.mxu0 %vm478_vm0, %v424_v44  ;;  %2616 = vmatprep.mubr.msk.f32.mxu1 %vm478_vm0, %v456_v45 }
  0x42   : > { %2569 = vmatmul.mubr.msk.f32.gmra.mxu0 %vm478_vm0, %v425_v46  ;;  %2617 = vmatmul.mubr.msk.f32.gmra.mxu1 %vm478_vm0, %v457_v47 }
  0x43   : > { %2571 = vmatprep.mubr.msk.f32.mxu0 %vm478_vm0, %v426_v48  ;;  %2619 = vmatprep.mubr.msk.f32.mxu1 %vm478_vm0, %v458_v49 }
  0x46   : > { %2572 = vmatmul.mubr.msk.f32.gmra.mxu0 %vm478_vm0, %v427_v50  ;;  %2620 = vmatmul.mubr.msk.f32.gmra.mxu1 %vm478_vm0, %v459_v51 }
  0x47   : > { %2574 = vmatprep.mubr.msk.f32.mxu0 %vm478_vm0, %v428_v52  ;;  %2622 = vmatprep.mubr.msk.f32.mxu1 %vm478_vm0, %v460_v53 }
  0x4a   : > { %2575 = vmatmul.mubr.msk.f32.gmra.mxu0 %vm478_vm0, %v429_v54  ;;  %2623 = vmatmul.mubr.msk.f32.gmra.mxu1 %vm478_vm0, %v461_v55 }
  0x4b   : > { %2577 = vmatprep.mubr.msk.f32.mxu0 %vm478_vm0, %v430_v56  ;;  %2625 = vmatprep.mubr.msk.f32.mxu1 %vm478_vm0, %v462_v57 }
  0x4e   : > { %2578 = vmatmul.mubr.msk.f32.gmra.mxu0 %vm478_vm0, %v431_v58  ;;  %2626 = vmatmul.mubr.msk.f32.gmra.mxu1 %vm478_vm0, %v463_v59 }
  0x4f   : > { %2580 = vmatprep.mubr.msk.f32.mxu0 %vm478_vm0, %v432_v60  ;;  %2628 = vmatprep.mubr.msk.f32.mxu1 %vm478_vm0, %v464_v61 }
  0x52   : > { %2581 = vmatmul.mubr.msk.f32.gmra.mxu0 %vm478_vm0, %v433_v62  ;;  %2629 = vmatmul.mubr.msk.f32.gmra.mxu1 %vm478_vm0, %v465_v63 }
  0x53   : > { %2583 = vmatprep.mubr.msk.f32.mxu0 %vm478_vm0, %v434_v0  ;;  %2631 = vmatprep.mubr.msk.f32.mxu1 %vm478_vm0, %v466_v1 }
  0x56   : > { %2584 = vmatmul.mubr.msk.f32.gmra.mxu0 %vm478_vm0, %v435_v2  ;;  %2632 = vmatmul.mubr.msk.f32.gmra.mxu1 %vm478_vm0, %v467_v3 }
  0x57   : > { %2586 = vmatprep.mubr.msk.f32.mxu0 %vm478_vm0, %v436_v4  ;;  %2634 = vmatprep.mubr.msk.f32.mxu1 %vm478_vm0, %v468_v5 }
  0x5a   : > { %2587 = vmatmul.mubr.msk.f32.gmra.mxu0 %vm478_vm0, %v437_v6  ;;  %2635 = vmatmul.mubr.msk.f32.gmra.mxu1 %vm478_vm0, %v469_v7 }
  0xde   : > { %v2543_v9 = vpop.f32.mrf.mxu0  ;;  %v2591_v10 = vpop.f32.mrf.mxu1 }
  0xdf   : > { %v1259_v11 = vadd.f32 %v2543_v9, %v3173_v8  ;;  %v1291_v12 = vadd.f32 %v2591_v10, %v3173_v8 }
  0xe0   : > { %v737_v13 = vpop.f32.mrf.mxu0  ;;  %v897_v14 = vpop.f32.mrf.mxu1 }
  0xe1   : > { %v1387_v15 = vmul.f32 0.2, %v1259_v11  ;;  %v1419_v16 = vmul.f32 0.2, %v1291_v12  ;;  %v1258_v17 = vadd.f32 %v3173_v8, %v737_v13  ;;  %vm1355_vm1 = vcmp.gt.f32.partialorder %v1291_v12, 0.0 }
  0xe2   : > { %v2546_v18 = vpop.f32.mrf.mxu0  ;;  %v2594_v19 = vpop.f32.mrf.mxu1  ;;  %vm1323_vm2 = vcmp.gt.f32.partialorder %v1259_v11, 0.0  ;;  %v1290_v21 = vadd.f32 %v3173_v8, %v897_v14 }
  0xe3   : > { %v1386_v20 = vmul.f32 0.2, %v1258_v17  ;;  %v1261_v22 = vadd.f32 %v2546_v18, %v3173_v8  ;;  %v1293_v23 = vadd.f32 %v2594_v19, %v3173_v8  ;;  %v1483_v27 = vsel %vm1355_vm1, %v1291_v12, %v1419_v16 }
  0xe4   : > { %v747_v25 = vpop.f32.mrf.mxu0  ;;  %v907_v26 = vpop.f32.mrf.mxu1  ;;  %v1451_v28 = vsel %vm1323_vm2, %v1259_v11, %v1387_v15  ;;  %vm1322_vm3 = vcmp.gt.f32.partialorder %v1258_v17, 0.0  ;;  %v1554_v31 = vmul.f32 %v3184_v24, %v1483_v27  ;;  %v1418_v34 = vmul.f32 0.2, %v1290_v21 }
  0xe5   : > { %v1389_v29 = vmul.f32 0.2, %v1261_v22  ;;  %v1260_v30 = vadd.f32 %v3173_v8, %v747_v25  ;;  %v1522_v32 = vmul.f32 %v3184_v24, %v1451_v28  ;;  %vm1325_vm4 = vcmp.gt.f32.partialorder %v1261_v22, 0.0 }
  0xe6   : > { %v2549_v33 = vpop.f32.mrf.mxu0  ;;  %v1421_v35 = vmul.f32 0.2, %v1293_v23  ;;  %v1292_v36 = vadd.f32 %v3173_v8, %v907_v26  ;;  %v1450_v37 = vsel %vm1322_vm3, %v1258_v17, %v1386_v20  ;;  %1651 = vadd.xlane.f32.xlu1 %v1554_v31  ;;  %v2597_v40 = vpop.f32.mrf.mxu1  ;;  %vm1354_vm5 = vcmp.gt.f32.partialorder %v1290_v21, 0.0 }
  0xe7   : > { %1587 = vadd.xlane.f32.xlu0 %v1522_v32  ;;  %v1453_v38 = vsel %vm1325_vm4, %v1261_v22, %v1389_v29  ;;  %vm1357_vm6 = vcmp.gt.f32.partialorder %v1293_v23, 0.0  ;;  %v1388_v42 = vmul.f32 0.2, %v1260_v30  ;;  %v1263_v43 = vadd.f32 %v2549_v33, %v3173_v8 }
  0xe8   : > { %v757_v39 = vpop.f32.mrf.mxu0  ;;  %v1524_v41 = vmul.f32 %v3184_v24, %v1453_v38  ;;  %v1521_v44 = vmul.f32 %v3184_v24, %v1450_v37  ;;  %v1420_v45 = vmul.f32 0.2, %v1292_v36  ;;  %v1482_v47 = vsel %vm1354_vm5, %v1290_v21, %v1418_v34  ;;  %v917_v49 = vpop.f32.mrf.mxu1 }
  0xe9   : > { %v1262_v46 = vadd.f32 %v3173_v8, %v757_v39  ;;  %v1485_v48 = vsel %vm1357_vm6, %v1293_v23, %v1421_v35  ;;  %vm1356_vm7 = vcmp.gt.f32.partialorder %v1292_v36, 0.0  ;;  %vm1324_vm8 = vcmp.gt.f32.partialorder %v1260_v30, 0.0 }
  0xea   : > { %1591 = vadd.xlane.f32.xlu1 %v1524_v41  ;;  %v2552_v50 = vpop.f32.mrf.mxu0  ;;  %v1391_v51 = vmul.f32 0.2, %v1263_v43  ;;  %v1295_v52 = vadd.f32 %v2597_v40, %v3173_v8  ;;  %v1553_v53 = vmul.f32 %v3184_v24, %v1482_v47  ;;  %v1556_v54 = vmul.f32 %v3184_v24, %v1485_v48  ;;  %v2600_v60 = vpop.f32.mrf.mxu1 }
  0xeb   : > { %1585 = vadd.xlane.f32.xlu0 %v1521_v44  ;;  %v1390_v55 = vmul.f32 0.2, %v1262_v46  ;;  %v1294_v56 = vadd.f32 %v3173_v8, %v917_v49  ;;  %v1484_v57 = vsel %vm1356_vm7, %v1292_v36, %v1420_v45  ;;  %v1452_v58 = vsel %vm1324_vm8, %v1260_v30, %v1388_v42 }
  0xec   : > { %v767_v59 = vpop.f32.mrf.mxu0  ;;  %vm1327_vm9 = vcmp.gt.f32.partialorder %v1263_v43, 0.0  ;;  %vm1326_vm10 = vcmp.gt.f32.partialorder %v1262_v46, 0.0  ;;  %v1423_v61 = vmul.f32 0.2, %v1295_v52  ;;  %v1265_v62 = vadd.f32 %v2552_v50, %v3173_v8  ;;  %v927_v5 = vpop.f32.mrf.mxu1 }
  0xed   : > { %v1555_v63 = vmul.f32 %v3184_v24, %v1484_v57  ;;  %v1523_v0 = vmul.f32 %v3184_v24, %v1452_v58  ;;  %v1422_v1 = vmul.f32 0.2, %v1294_v56  ;;  %v1264_v2 = vadd.f32 %v3173_v8, %v767_v59 }
  0xee   : > { %1655 = vadd.xlane.f32.xlu1 %v1556_v54  ;;  %v1455_v3 = vsel %vm1327_vm9, %v1263_v43, %v1391_v51  ;;  %v1454_v4 = vsel %vm1326_vm10, %v1262_v46, %v1390_v55  ;;  %v2555_v6 = vpop.f32.mrf.mxu0  ;;  %vm1359_vm11 = vcmp.gt.f32.partialorder %v1295_v52, 0.0  ;;  %vm1358_vm12 = vcmp.gt.f32.partialorder %v1294_v56, 0.0  ;;  %v2603_v17 = vpop.f32.mrf.mxu1 }
  0xef   : > { %1649 = vadd.xlane.f32.xlu0 %v1553_v53  ;;  %v1393_v7 = vmul.f32 0.2, %v1265_v62  ;;  %v1297_v9 = vadd.f32 %v2600_v60, %v3173_v8  ;;  %v1526_v10 = vmul.f32 %v3184_v24, %v1455_v3  ;;  %v1525_v11 = vmul.f32 %v3184_v24, %v1454_v4 }
  0xf0   : > { %v1392_v12 = vmul.f32 0.2, %v1264_v2  ;;  %v1296_v13 = vadd.f32 %v3173_v8, %v927_v5  ;;  %v1487_v14 = vsel %vm1359_vm11, %v1295_v52, %v1423_v61  ;;  %v1486_v15 = vsel %vm1358_vm12, %v1294_v56, %v1422_v1  ;;  %v777_v16 = vpop.f32.mrf.mxu0  ;;  %v937_v27 = vpop.f32.mrf.mxu1 }
  0xf1   : > { %vm1329_vm13 = vcmp.gt.f32.partialorder %v1265_v62, 0.0  ;;  %vm1328_vm14 = vcmp.gt.f32.partialorder %v1264_v2, 0.0  ;;  %v1425_v18 = vmul.f32 0.2, %v1297_v9  ;;  %v1267_v19 = vadd.f32 %v2555_v6, %v3173_v8 }
  0xf2   : > { %1589 = vadd.xlane.f32.xlu1 %v1523_v0  ;;  %v1558_v20 = vmul.f32 %v3184_v24, %v1487_v14  ;;  %v1557_v21 = vmul.f32 %v3184_v24, %v1486_v15  ;;  %v1424_v22 = vmul.f32 0.2, %v1296_v13  ;;  %v1266_v23 = vadd.f32 %v3173_v8, %v777_v16  ;;  %v2558_v28 = vpop.f32.mrf.mxu0  ;;  %v2606_v38 = vpop.f32.mrf.mxu1 }
  0xf3   : > { %1653 = vadd.xlane.f32.xlu0 %v1555_v63  ;;  %v1457_v25 = vsel %vm1329_vm13, %v1265_v62, %v1393_v7  ;;  %v1456_v26 = vsel %vm1328_vm14, %v1264_v2, %v1392_v12  ;;  %vm1361_vm15 = vcmp.gt.f32.partialorder %v1297_v9, 0.0  ;;  %vm1360_vm0 = vcmp.gt.f32.partialorder %v1296_v13, 0.0 }
  0xf4   : > { %v1395_v29 = vmul.f32 0.2, %v1267_v19  ;;  %v1299_v30 = vadd.f32 %v2603_v17, %v3173_v8  ;;  %v1528_v31 = vmul.f32 %v3184_v24, %v1457_v25  ;;  %v1527_v32 = vmul.f32 %v3184_v24, %v1456_v26  ;;  %v787_v37 = vpop.f32.mrf.mxu0  ;;  %v947_v47 = vpop.f32.mrf.mxu1 }
  0xf5   : > { %v1394_v33 = vmul.f32 0.2, %v1266_v23  ;;  %v1298_v34 = vadd.f32 %v3173_v8, %v937_v27  ;;  %v1489_v35 = vsel %vm1361_vm15, %v1297_v9, %v1425_v18  ;;  %v1488_v36 = vsel %vm1360_vm0, %v1296_v13, %v1424_v22 }
  0xf6   : > { %1595 = vadd.xlane.f32.xlu1 %v1526_v10  ;;  %vm1331_vm1 = vcmp.gt.f32.partialorder %v1267_v19, 0.0  ;;  %vm1330_vm2 = vcmp.gt.f32.partialorder %v1266_v23, 0.0  ;;  %v1427_v39 = vmul.f32 0.2, %v1299_v30  ;;  %v1269_v40 = vadd.f32 %v2558_v28, %v3173_v8  ;;  %v2561_v48 = vpop.f32.mrf.mxu0  ;;  %v2609_v58 = vpop.f32.mrf.mxu1 }
  0xf7   : > { %1593 = vadd.xlane.f32.xlu0 %v1525_v11  ;;  %v1560_v41 = vmul.f32 %v3184_v24, %v1489_v35  ;;  %v1559_v42 = vmul.f32 %v3184_v24, %v1488_v36  ;;  %v1426_v43 = vmul.f32 0.2, %v1298_v34  ;;  %v1268_v44 = vadd.f32 %v3173_v8, %v787_v37 }
  0xf8   : > { %v1459_v45 = vsel %vm1331_vm1, %v1267_v19, %v1395_v29  ;;  %v1458_v46 = vsel %vm1330_vm2, %v1266_v23, %v1394_v33  ;;  %vm1363_vm3 = vcmp.gt.f32.partialorder %v1299_v30, 0.0  ;;  %vm1362_vm4 = vcmp.gt.f32.partialorder %v1298_v34, 0.0  ;;  %v797_v57 = vpop.f32.mrf.mxu0  ;;  %v957_v3 = vpop.f32.mrf.mxu1 }
  0xf9   : > { %v1397_v49 = vmul.f32 0.2, %v1269_v40  ;;  %v1301_v50 = vadd.f32 %v2606_v38, %v3173_v8  ;;  %v1530_v51 = vmul.f32 %v3184_v24, %v1459_v45  ;;  %v1529_v52 = vmul.f32 %v3184_v24, %v1458_v46 }
  0xfa   : > { %1659 = vadd.xlane.f32.xlu1 %v1558_v20  ;;  %v1396_v53 = vmul.f32 0.2, %v1268_v44  ;;  %v1300_v54 = vadd.f32 %v3173_v8, %v947_v47  ;;  %v1491_v55 = vsel %vm1363_vm3, %v1299_v30, %v1427_v39  ;;  %v1490_v56 = vsel %vm1362_vm4, %v1298_v34, %v1426_v43  ;;  %v2564_v4 = vpop.f32.mrf.mxu0  ;;  %v2612_v15 = vpop.f32.mrf.mxu1 }
  0xfb   : > { %1657 = vadd.xlane.f32.xlu0 %v1557_v21  ;;  %vm1333_vm5 = vcmp.gt.f32.partialorder %v1269_v40, 0.0  ;;  %vm1332_vm6 = vcmp.gt.f32.partialorder %v1268_v44, 0.0  ;;  %v1429_v59 = vmul.f32 0.2, %v1301_v50  ;;  %v1271_v60 = vadd.f32 %v2561_v48, %v3173_v8 }
  0xfc   : > { %v1562_v61 = vmul.f32 %v3184_v24, %v1491_v55  ;;  %v1561_v62 = vmul.f32 %v3184_v24, %v1490_v56  ;;  %v1428_v63 = vmul.f32 0.2, %v1300_v54  ;;  %v1270_v0 = vadd.f32 %v3173_v8, %v797_v57  ;;  %v807_v14 = vpop.f32.mrf.mxu0  ;;  %v967_v25 = vpop.f32.mrf.mxu1 }
  0xfd   : > { %v1461_v1 = vsel %vm1333_vm5, %v1269_v40, %v1397_v49  ;;  %v1460_v2 = vsel %vm1332_vm6, %v1268_v44, %v1396_v53  ;;  %vm1365_vm7 = vcmp.gt.f32.partialorder %v1301_v50, 0.0  ;;  %vm1364_vm8 = vcmp.gt.f32.partialorder %v1300_v54, 0.0 }
  0xfe   : > { %1599 = vadd.xlane.f32.xlu1 %v1528_v31  ;;  %v1399_v5 = vmul.f32 0.2, %v1271_v60  ;;  %v1303_v6 = vadd.f32 %v2609_v58, %v3173_v8  ;;  %v1532_v7 = vmul.f32 %v3184_v24, %v1461_v1  ;;  %v1531_v9 = vmul.f32 %v3184_v24, %v1460_v2  ;;  %v2567_v26 = vpop.f32.mrf.mxu0  ;;  %v2615_v36 = vpop.f32.mrf.mxu1 }
  0xff   : > { %1597 = vadd.xlane.f32.xlu0 %v1527_v32  ;;  %v1398_v10 = vmul.f32 0.2, %v1270_v0  ;;  %v1302_v11 = vadd.f32 %v3173_v8, %v957_v3  ;;  %v1493_v12 = vsel %vm1365_vm7, %v1301_v50, %v1429_v59  ;;  %v1492_v13 = vsel %vm1364_vm8, %v1300_v54, %v1428_v63 }
 0x100   : > { %vm1335_vm9 = vcmp.gt.f32.partialorder %v1271_v60, 0.0  ;;  %vm1334_vm10 = vcmp.gt.f32.partialorder %v1270_v0, 0.0  ;;  %v1431_v16 = vmul.f32 0.2, %v1303_v6  ;;  %v1273_v17 = vadd.f32 %v2564_v4, %v3173_v8  ;;  %v817_v35 = vpop.f32.mrf.mxu0  ;;  %v977_v45 = vpop.f32.mrf.mxu1 }
 0x101   : > { %v1564_v18 = vmul.f32 %v3184_v24, %v1493_v12  ;;  %v1563_v19 = vmul.f32 %v3184_v24, %v1492_v13  ;;  %v1430_v20 = vmul.f32 0.2, %v1302_v11  ;;  %v1272_v21 = vadd.f32 %v3173_v8, %v807_v14 }
 0x102   : > { %1663 = vadd.xlane.f32.xlu1 %v1560_v41  ;;  %v1463_v22 = vsel %vm1335_vm9, %v1271_v60, %v1399_v5  ;;  %v1462_v23 = vsel %vm1334_vm10, %v1270_v0, %v1398_v10  ;;  %vm1367_vm11 = vcmp.gt.f32.partialorder %v1303_v6, 0.0  ;;  %vm1366_vm12 = vcmp.gt.f32.partialorder %v1302_v11, 0.0  ;;  %v2570_v46 = vpop.f32.mrf.mxu0  ;;  %v2618_v56 = vpop.f32.mrf.mxu1 }
 0x103   : > { %1661 = vadd.xlane.f32.xlu0 %v1559_v42  ;;  %v1401_v27 = vmul.f32 0.2, %v1273_v17  ;;  %v1305_v28 = vadd.f32 %v2612_v15, %v3173_v8  ;;  %v1534_v29 = vmul.f32 %v3184_v24, %v1463_v22  ;;  %v1533_v30 = vmul.f32 %v3184_v24, %v1462_v23 }
 0x104   : > { %v1400_v31 = vmul.f32 0.2, %v1272_v21  ;;  %v1304_v32 = vadd.f32 %v3173_v8, %v967_v25  ;;  %v1495_v33 = vsel %vm1367_vm11, %v1303_v6, %v1431_v16  ;;  %v1494_v34 = vsel %vm1366_vm12, %v1302_v11, %v1430_v20  ;;  %v827_v55 = vpop.f32.mrf.mxu0  ;;  %v987_v1 = vpop.f32.mrf.mxu1 }
 0x105   : > { %vm1337_vm13 = vcmp.gt.f32.partialorder %v1273_v17, 0.0  ;;  %vm1336_vm14 = vcmp.gt.f32.partialorder %v1272_v21, 0.0  ;;  %v1433_v37 = vmul.f32 0.2, %v1305_v28  ;;  %v1275_v38 = vadd.f32 %v2567_v26, %v3173_v8 }
 0x106   : > { %1603 = vadd.xlane.f32.xlu1 %v1530_v51  ;;  %v1566_v39 = vmul.f32 %v3184_v24, %v1495_v33  ;;  %v1565_v40 = vmul.f32 %v3184_v24, %v1494_v34  ;;  %v1432_v41 = vmul.f32 0.2, %v1304_v32  ;;  %v1274_v42 = vadd.f32 %v3173_v8, %v817_v35  ;;  %v2573_v2 = vpop.f32.mrf.mxu0  ;;  %v2621_v13 = vpop.f32.mrf.mxu1 }
 0x107   : > { %1601 = vadd.xlane.f32.xlu0 %v1529_v52  ;;  %v1465_v43 = vsel %vm1337_vm13, %v1273_v17, %v1401_v27  ;;  %v1464_v44 = vsel %vm1336_vm14, %v1272_v21, %v1400_v31  ;;  %vm1369_vm15 = vcmp.gt.f32.partialorder %v1305_v28, 0.0  ;;  %vm1368_vm0 = vcmp.gt.f32.partialorder %v1304_v32, 0.0 }
 0x108   : > { %v1403_v47 = vmul.f32 0.2, %v1275_v38  ;;  %v1307_v48 = vadd.f32 %v2615_v36, %v3173_v8  ;;  %v1536_v49 = vmul.f32 %v3184_v24, %v1465_v43  ;;  %v1535_v50 = vmul.f32 %v3184_v24, %v1464_v44  ;;  %v837_v12 = vpop.f32.mrf.mxu0  ;;  %v997_v22 = vpop.f32.mrf.mxu1 }
 0x109   : > { %v1402_v51 = vmul.f32 0.2, %v1274_v42  ;;  %v1306_v52 = vadd.f32 %v3173_v8, %v977_v45  ;;  %v1497_v53 = vsel %vm1369_vm15, %v1305_v28, %v1433_v37  ;;  %v1496_v54 = vsel %vm1368_vm0, %v1304_v32, %v1432_v41 }
 0x10a   : > { %1667 = vadd.xlane.f32.xlu1 %v1562_v61  ;;  %vm1339_vm1 = vcmp.gt.f32.partialorder %v1275_v38, 0.0  ;;  %vm1338_vm2 = vcmp.gt.f32.partialorder %v1274_v42, 0.0  ;;  %v1435_v57 = vmul.f32 0.2, %v1307_v48  ;;  %v1277_v58 = vadd.f32 %v2570_v46, %v3173_v8  ;;  %v2576_v23 = vpop.f32.mrf.mxu0  ;;  %v2624_v34 = vpop.f32.mrf.mxu1 }
 0x10b   : > { %1665 = vadd.xlane.f32.xlu0 %v1561_v62  ;;  %v1568_v59 = vmul.f32 %v3184_v24, %v1497_v53  ;;  %v1567_v60 = vmul.f32 %v3184_v24, %v1496_v54  ;;  %v1434_v61 = vmul.f32 0.2, %v1306_v52  ;;  %v1276_v62 = vadd.f32 %v3173_v8, %v827_v55 }
 0x10c   : > { %v1467_v63 = vsel %vm1339_vm1, %v1275_v38, %v1403_v47  ;;  %v1466_v0 = vsel %vm1338_vm2, %v1274_v42, %v1402_v51  ;;  %vm1371_vm3 = vcmp.gt.f32.partialorder %v1307_v48, 0.0  ;;  %vm1370_vm4 = vcmp.gt.f32.partialorder %v1306_v52, 0.0  ;;  %v847_v33 = vpop.f32.mrf.mxu0  ;;  %v1007_v43 = vpop.f32.mrf.mxu1 }
 0x10d   : > { %v1405_v3 = vmul.f32 0.2, %v1277_v58  ;;  %v1309_v4 = vadd.f32 %v2618_v56, %v3173_v8  ;;  %v1538_v5 = vmul.f32 %v3184_v24, %v1467_v63  ;;  %v1537_v6 = vmul.f32 %v3184_v24, %v1466_v0 }
 0x10e   : > { %1607 = vadd.xlane.f32.xlu1 %v1532_v7  ;;  %v1404_v7 = vmul.f32 0.2, %v1276_v62  ;;  %v1499_v10 = vsel %vm1371_vm3, %v1307_v48, %v1435_v57  ;;  %v1498_v11 = vsel %vm1370_vm4, %v1306_v52, %v1434_v61  ;;  %vm1341_vm5 = vcmp.gt.f32.partialorder %v1277_v58, 0.0  ;;  %v2579_v44 = vpop.f32.mrf.mxu0  ;;  %v2627_v54 = vpop.f32.mrf.mxu1 }
 0x10f   : > { %1605 = vadd.xlane.f32.xlu0 %v1531_v9  ;;  %v1308_v9 = vadd.f32 %v3173_v8, %v987_v1  ;;  %vm1340_vm6 = vcmp.gt.f32.partialorder %v1276_v62, 0.0  ;;  %v1437_v14 = vmul.f32 0.2, %v1309_v4  ;;  %v1279_v15 = vadd.f32 %v2573_v2, %v3173_v8 }
 0x110   : > { %v1570_v16 = vmul.f32 %v3184_v24, %v1499_v10  ;;  %v1569_v17 = vmul.f32 %v3184_v24, %v1498_v11  ;;  %v1469_v20 = vsel %vm1341_vm5, %v1277_v58, %v1405_v3  ;;  %v1468_v21 = vsel %vm1340_vm6, %v1276_v62, %v1404_v7  ;;  %v857_v53 = vpop.f32.mrf.mxu0  ;;  %v1017_v63 = vpop.f32.mrf.mxu1 }
 0x111   : > { %vm1373_vm7 = vcmp.gt.f32.partialorder %v1309_v4, 0.0  ;;  %vm1372_vm8 = vcmp.gt.f32.partialorder %v1308_v9, 0.0  ;;  %v1407_v25 = vmul.f32 0.2, %v1279_v15  ;;  %v1311_v26 = vadd.f32 %v2621_v13, %v3173_v8 }
 0x112   : > { %1671 = vadd.xlane.f32.xlu1 %v1564_v18  ;;  %v1436_v18 = vmul.f32 0.2, %v1308_v9  ;;  %v1540_v27 = vmul.f32 %v3184_v24, %v1469_v20  ;;  %v1539_v28 = vmul.f32 %v3184_v24, %v1468_v21  ;;  %v1501_v31 = vsel %vm1373_vm7, %v1309_v4, %v1437_v14  ;;  %v2582_v0 = vpop.f32.mrf.mxu0  ;;  %v2630_v11 = vpop.f32.mrf.mxu1 }
 0x113   : > { %1669 = vadd.xlane.f32.xlu0 %v1563_v19  ;;  %v1278_v19 = vadd.f32 %v3173_v8, %v837_v12  ;;  %vm1343_vm9 = vcmp.gt.f32.partialorder %v1279_v15, 0.0  ;;  %v1439_v35 = vmul.f32 0.2, %v1311_v26  ;;  %v1281_v36 = vadd.f32 %v2576_v23, %v3173_v8 }
 0x114   : > { %v1500_v32 = vsel %vm1372_vm8, %v1308_v9, %v1436_v18  ;;  %v1572_v37 = vmul.f32 %v3184_v24, %v1501_v31  ;;  %v1471_v41 = vsel %vm1343_vm9, %v1279_v15, %v1407_v25  ;;  %vm1375_vm11 = vcmp.gt.f32.partialorder %v1311_v26, 0.0  ;;  %v867_v10 = vpop.f32.mrf.mxu0  ;;  %v1027_v20 = vpop.f32.mrf.mxu1 }
 0x115   : > { %vm1342_vm10 = vcmp.gt.f32.partialorder %v1278_v19, 0.0  ;;  %v1571_v38 = vmul.f32 %v3184_v24, %v1500_v32  ;;  %v1409_v45 = vmul.f32 0.2, %v1281_v36  ;;  %v1313_v46 = vadd.f32 %v2624_v34, %v3173_v8 }
 0x116   : > { %1611 = vadd.xlane.f32.xlu1 %v1534_v29  ;;  %v1406_v29 = vmul.f32 0.2, %v1278_v19  ;;  %v1542_v47 = vmul.f32 %v3184_v24, %v1471_v41  ;;  %v1503_v51 = vsel %vm1375_vm11, %v1311_v26, %v1439_v35  ;;  %vm1345_vm13 = vcmp.gt.f32.partialorder %v1281_v36, 0.0  ;;  %v2585_v21 = vpop.f32.mrf.mxu0  ;;  %v2633_v32 = vpop.f32.mrf.mxu1 }
 0x117   : > { %1609 = vadd.xlane.f32.xlu0 %v1533_v30  ;;  %v1310_v30 = vadd.f32 %v3173_v8, %v997_v22  ;;  %v1441_v55 = vmul.f32 0.2, %v1313_v46  ;;  %v1283_v56 = vadd.f32 %v2579_v44, %v3173_v8  ;;  %v1574_v57 = vmul.f32 %v3184_v24, %v1503_v51 }
 0x118   : > { %v1470_v42 = vsel %vm1342_vm10, %v1278_v19, %v1406_v29  ;;  %v1473_v61 = vsel %vm1345_vm13, %v1281_v36, %v1409_v45  ;;  %vm1377_vm15 = vcmp.gt.f32.partialorder %v1313_v46, 0.0  ;;  %v1315_v2 = vadd.f32 %v2627_v54, %v3173_v8  ;;  %v877_v31 = vpop.f32.mrf.mxu0  ;;  %v1037_v41 = vpop.f32.mrf.mxu1 }
 0x119   : > { %vm1374_vm12 = vcmp.gt.f32.partialorder %v1310_v30, 0.0  ;;  %v1541_v48 = vmul.f32 %v3184_v24, %v1470_v42  ;;  %v1411_v1 = vmul.f32 0.2, %v1283_v56  ;;  %v1544_v3 = vmul.f32 %v3184_v24, %v1473_v61 }
 0x11a   : > { %1675 = vadd.xlane.f32.xlu1 %v1566_v39  ;;  %v1438_v39 = vmul.f32 0.2, %v1310_v30  ;;  %v1505_v7 = vsel %vm1377_vm15, %v1313_v46, %v1441_v55  ;;  %vm1347_vm1 = vcmp.gt.f32.partialorder %v1283_v56, 0.0  ;;  %v1443_v12 = vmul.f32 0.2, %v1315_v2  ;;  %v2588_v42 = vpop.f32.mrf.mxu0 }
 0x11b   : > { %1673 = vadd.xlane.f32.xlu0 %v1565_v40  ;;  %v1280_v40 = vadd.f32 %v3173_v8, %v847_v33  ;;  %v1285_v13 = vadd.f32 %v2582_v0, %v3173_v8  ;;  %v1576_v14 = vmul.f32 %v3184_v24, %v1505_v7  ;;  %v1475_v18 = vsel %vm1347_vm1, %v1283_v56, %v1411_v1 }
 0x11c   : > { %v1502_v52 = vsel %vm1374_vm12, %v1310_v30, %v1438_v39  ;;  %vm1379_vm3 = vcmp.gt.f32.partialorder %v1315_v2, 0.0  ;;  %v1317_v23 = vadd.f32 %v2630_v11, %v3173_v8  ;;  %v1546_v25 = vmul.f32 %v3184_v24, %v1475_v18  ;;  %v887_v51 = vpop.f32.mrf.mxu0 }
 0x11d   : > { %vm1344_vm14 = vcmp.gt.f32.partialorder %v1280_v40, 0.0  ;;  %v1573_v58 = vmul.f32 %v3184_v24, %v1502_v52  ;;  %v1413_v22 = vmul.f32 0.2, %v1285_v13  ;;  %v1507_v29 = vsel %vm1379_vm3, %v1315_v2, %v1443_v12  ;;  %v2636_v52 = vpop.f32.mrf.mxu1 }
 0x11e   : > { %1615 = vadd.xlane.f32.xlu1 %v1536_v49  ;;  %v1408_v49 = vmul.f32 0.2, %v1280_v40  ;;  %vm1349_vm5 = vcmp.gt.f32.partialorder %v1285_v13, 0.0  ;;  %v1445_v33 = vmul.f32 0.2, %v1317_v23  ;;  %v1287_v34 = vadd.f32 %v2585_v21, %v3173_v8 }
 0x11f   : > { %1613 = vadd.xlane.f32.xlu0 %v1535_v50  ;;  %v1312_v50 = vadd.f32 %v3173_v8, %v1007_v43  ;;  %v1578_v35 = vmul.f32 %v3184_v24, %v1507_v29  ;;  %v1477_v39 = vsel %vm1349_vm5, %v1285_v13, %v1413_v22  ;;  %vm1381_vm7 = vcmp.gt.f32.partialorder %v1317_v23, 0.0  ;;  %v1047_v61 = vpop.f32.mrf.mxu1 }
 0x120   : > { %v1472_v62 = vsel %vm1344_vm14, %v1280_v40, %v1408_v49  ;;  %v1415_v43 = vmul.f32 0.2, %v1287_v34  ;;  %v1319_v44 = vadd.f32 %v2633_v32, %v3173_v8  ;;  %v1548_v45 = vmul.f32 %v3184_v24, %v1477_v39 }
 0x121   : > { %vm1376_vm0 = vcmp.gt.f32.partialorder %v1312_v50, 0.0  ;;  %v1543_v4 = vmul.f32 %v3184_v24, %v1472_v62  ;;  %v1509_v49 = vsel %vm1381_vm7, %v1317_v23, %v1445_v33  ;;  %vm1351_vm9 = vcmp.gt.f32.partialorder %v1287_v34, 0.0 }
 0x122   : > { %1679 = vadd.xlane.f32.xlu1 %v1568_v59  ;;  %v1440_v59 = vmul.f32 0.2, %v1312_v50  ;;  %v1289_v54 = vadd.f32 %v2588_v42, %v3173_v8  ;;  %v1580_v55 = vmul.f32 %v3184_v24, %v1509_v49  ;;  %vm1383_vm11 = vcmp.gt.f32.partialorder %v1319_v44, 0.0 }
 0x123   : > { %1677 = vadd.xlane.f32.xlu0 %v1567_v60  ;;  %v1282_v60 = vadd.f32 %v3173_v8, %v857_v53  ;;  %v1447_v53 = vmul.f32 0.2, %v1319_v44  ;;  %v3308_v18 = vstv %s1713_s25  ;;  %vm2163_vm1 = vcmask 7168  }
 0x124   : > { %v1504_v9 = vsel %vm1376_vm0, %v1312_v50, %v1440_v59  ;;  %v1479_v59 = vsel %vm1351_vm9, %v1287_v34, %v1415_v43  ;;  %v1417_v62 = vmul.f32 0.2, %v1289_v54  ;;  %vm1353_vm13 = vcmp.gt.f32.partialorder %v1289_v54, 0.0 }
 0x125   : > { %vm1346_vm2 = vcmp.gt.f32.partialorder %v1282_v60, 0.0  ;;  %v1575_v15 = vmul.f32 %v3184_v24, %v1504_v9  ;;  %v1550_v0 = vmul.f32 %v3184_v24, %v1479_v59 }
 0x126   : > { %1619 = vadd.xlane.f32.xlu1 %v1538_v5  ;;  %v1410_v5 = vmul.f32 0.2, %v1282_v60  ;;  %v1481_v11 = vsel %vm1353_vm13, %v1289_v54, %v1417_v62 }
 0x127   : > { %1617 = vadd.xlane.f32.xlu0 %v1537_v6  ;;  %v1314_v6 = vadd.f32 %v3173_v8, %v1017_v63  ;;  %v1321_v63 = vadd.f32 %v2636_v52, %v3173_v8 }
 0x128   : > { %v1474_v19 = vsel %vm1346_vm2, %v1282_v60, %v1410_v5 }
 0x129   : > { %vm1378_vm4 = vcmp.gt.f32.partialorder %v1314_v6, 0.0  ;;  %v1545_v26 = vmul.f32 %v3184_v24, %v1474_v19  ;;  %v1449_v9 = vmul.f32 0.2, %v1321_v63  ;;  %vm1385_vm15 = vcmp.gt.f32.partialorder %v1321_v63, 0.0 }
 0x12a   : > { %1683 = vadd.xlane.f32.xlu1 %v1570_v16  ;;  %v1442_v16 = vmul.f32 0.2, %v1314_v6 }
 0x12b   : > { %1681 = vadd.xlane.f32.xlu0 %v1569_v17  ;;  %v1284_v17 = vadd.f32 %v3173_v8, %v867_v10 }
 0x12c   : > { %v1506_v30 = vsel %vm1378_vm4, %v1314_v6, %v1442_v16 }
 0x12d   : > { %vm1348_vm6 = vcmp.gt.f32.partialorder %v1284_v17, 0.0  ;;  %v1577_v36 = vmul.f32 %v3184_v24, %v1506_v30 }
 0x12e   : > { %1623 = vadd.xlane.f32.xlu1 %v1540_v27  ;;  %v1412_v27 = vmul.f32 0.2, %v1284_v17 }
 0x12f   : > { %1621 = vadd.xlane.f32.xlu0 %v1539_v28  ;;  %v1316_v28 = vadd.f32 %v3173_v8, %v1027_v20 }
 0x130   : > { %v1476_v40 = vsel %vm1348_vm6, %v1284_v17, %v1412_v27 }
 0x131   : > { %vm1380_vm8 = vcmp.gt.f32.partialorder %v1316_v28, 0.0  ;;  %v1547_v46 = vmul.f32 %v3184_v24, %v1476_v40 }
 0x132   : > { %1687 = vadd.xlane.f32.xlu1 %v1572_v37  ;;  %v1444_v37 = vmul.f32 0.2, %v1316_v28 }
 0x133   : > { %1685 = vadd.xlane.f32.xlu0 %v1571_v38  ;;  %v1286_v38 = vadd.f32 %v3173_v8, %v877_v31 }
 0x134   : > { %v1508_v50 = vsel %vm1380_vm8, %v1316_v28, %v1444_v37 }
 0x135   : > { %vm1350_vm10 = vcmp.gt.f32.partialorder %v1286_v38, 0.0  ;;  %v1579_v56 = vmul.f32 %v3184_v24, %v1508_v50 }
 0x136   : > { %1627 = vadd.xlane.f32.xlu1 %v1542_v47  ;;  %v1414_v47 = vmul.f32 0.2, %v1286_v38 }
 0x137   : > { %1625 = vadd.xlane.f32.xlu0 %v1541_v48  ;;  %v1318_v48 = vadd.f32 %v3173_v8, %v1037_v41 }
 0x138   : > { %v1478_v60 = vsel %vm1350_vm10, %v1286_v38, %v1414_v47 }
 0x139   : > { %vm1382_vm12 = vcmp.gt.f32.partialorder %v1318_v48, 0.0  ;;  %v1549_v1 = vmul.f32 %v3184_v24, %v1478_v60 }
 0x13a   : > { %1691 = vadd.xlane.f32.xlu1 %v1574_v57  ;;  %v1446_v57 = vmul.f32 0.2, %v1318_v48 }
 0x13b   : > { %1689 = vadd.xlane.f32.xlu0 %v1573_v58  ;;  %v1288_v58 = vadd.f32 %v3173_v8, %v887_v51 }
 0x13c   : > { %v1510_v5 = vsel %vm1382_vm12, %v1318_v48, %v1446_v57 }
 0x13d   : > { %v1416_v2 = vmul.f32 0.2, %v1288_v58  ;;  %vm1352_vm14 = vcmp.gt.f32.partialorder %v1288_v58, 0.0  ;;  %v1581_v7 = vmul.f32 %v3184_v24, %v1510_v5 }
 0x13e   : > { %1631 = vadd.xlane.f32.xlu1 %v1544_v3  ;;  %v1320_v3 = vadd.f32 %v3173_v8, %v1047_v61  ;;  %v1552_v8 = vmul.f32 %v3184_v24, %v1481_v11 }
 0x13f   : > { %1629 = vadd.xlane.f32.xlu0 %v1543_v4  ;;  %v1511_v4 = vsel %vm1383_vm11, %v1319_v44, %v1447_v53  ;;  %v1480_v12 = vsel %vm1352_vm14, %v1288_v58, %v1416_v2 }
 0x140   : > { %v1582_v6 = vmul.f32 %v3184_v24, %v1511_v4  ;;  %v1448_v10 = vmul.f32 0.2, %v1320_v3  ;;  %vm1384_vm0 = vcmp.gt.f32.partialorder %v1320_v3, 0.0  ;;  %v1551_v13 = vmul.f32 %v3184_v24, %v1480_v12 }
 0x142   : > { %1695 = vadd.xlane.f32.xlu1 %v1576_v14  ;;  %v1513_v14 = vsel %vm1385_vm15, %v1321_v63, %v1449_v9 }
 0x143   : > { %1693 = vadd.xlane.f32.xlu0 %v1575_v15  ;;  %v1512_v15 = vsel %vm1384_vm0, %v1320_v3, %v1448_v10  ;;  %v1584_v16 = vmul.f32 %v3184_v24, %v1513_v14 }
 0x144   : > { %v1583_v17 = vmul.f32 %v3184_v24, %v1512_v15 }
 0x146   : > { %1635 = vadd.xlane.f32.xlu1 %v1546_v25 }
 0x147   : > { %1633 = vadd.xlane.f32.xlu0 %v1545_v26 }
 0x14a   : > { %1699 = vadd.xlane.f32.xlu1 %v1578_v35 }
 0x14b   : > { %1697 = vadd.xlane.f32.xlu0 %v1577_v36 }
 0x14e   : > { %1639 = vadd.xlane.f32.xlu1 %v1548_v45 }
 0x14f   : > { %1637 = vadd.xlane.f32.xlu0 %v1547_v46 }
 0x152   : > { %1703 = vadd.xlane.f32.xlu1 %v1580_v55 }
 0x153   : > { %1701 = vadd.xlane.f32.xlu0 %v1579_v56 }
 0x156   : > { %1643 = vadd.xlane.f32.xlu1 %v1550_v0 }
 0x157   : > { %1641 = vadd.xlane.f32.xlu0 %v1549_v1 }
 0x15a   : > { %1707 = vadd.xlane.f32.xlu1 %v1582_v6 }
 0x15b   : > { %1705 = vadd.xlane.f32.xlu0 %v1581_v7 }
 0x15e   : > { %1647 = vadd.xlane.f32.xlu1 %v1552_v8 }
 0x15f   : > { %1645 = vadd.xlane.f32.xlu0 %v1551_v13 }
 0x162   : > { %1711 = vadd.xlane.f32.xlu1 %v1584_v16 }
 0x163   : > { %1709 = vadd.xlane.f32.xlu0 %v1583_v17 }
 0x16f   : > { %v1652_v19 = vpop.xlane.xlu1 %1651 }
 0x170   : > { %v1588_v20 = vpop.xlane.xlu0 %1587  ;;  %v1748_v21 = vadd.f32 %v3308_v18, %v1652_v19 }
 0x171   : > { %v1716_v22 = vadd.f32 %v3308_v18, %v1588_v20 }
 0x172   : > { %v2420_v23 = vmul.f32 -1.442695, %v1748_v21 }
 0x173   : > { %v2388_v25 = vmul.f32 -1.442695, %v1716_v22  ;;  %v1592_v27 = vpop.xlane.xlu1 %1591 }
 0x174   : > { %v1586_v26 = vpop.xlane.xlu0 %1585  ;;  %2677 = vpow2.f32 %v2420_v23  ;;  %v1718_v24 = vadd.f32 %v3308_v18, %v1592_v27 }
 0x175   : > { %v1715_v28 = vadd.f32 %v3308_v18, %v1586_v26  ;;  %2679 = vpow2.f32 %v2388_v25 }
 0x176   : > { %v2390_v30 = vmul.f32 -1.442695, %v1718_v24 }
 0x177   : > { %v2387_v29 = vmul.f32 -1.442695, %v1715_v28  ;;  %v1656_v32 = vpop.xlane.xlu1 %1655 }
 0x178   : > { %v1650_v31 = vpop.xlane.xlu0 %1649  ;;  %v1750_v34 = vadd.f32 %v3308_v18, %v1656_v32 }
 0x179   : > { %2681 = vpow2.f32 %v2387_v29  ;;  %v1747_v33 = vadd.f32 %v3308_v18, %v1650_v31 }
 0x17a   : > { %2683 = vpow2.f32 %v2390_v30  ;;  %v2422_v36 = vmul.f32 -1.442695, %v1750_v34 }
 0x17b   : > { %v2419_v35 = vmul.f32 -1.442695, %v1747_v33  ;;  %v1590_v38 = vpop.xlane.xlu1 %1589 }
 0x17c   : > { %v1654_v37 = vpop.xlane.xlu0 %1653  ;;  %v1717_v40 = vadd.f32 %v3308_v18, %v1590_v38 }
 0x17d   : > { %2685 = vpow2.f32 %v2419_v35  ;;  %v1749_v39 = vadd.f32 %v3308_v18, %v1654_v37 }
 0x17e   : > { %2687 = vpow2.f32 %v2422_v36  ;;  %v2389_v42 = vmul.f32 -1.442695, %v1717_v40 }
 0x17f   : > { %v2421_v41 = vmul.f32 -1.442695, %v1749_v39  ;;  %v1596_v43 = vpop.xlane.xlu1 %1595 }
 0x180   : > { %v1594_v44 = vpop.xlane.xlu0 %1593  ;;  %v1720_v45 = vadd.f32 %v3308_v18, %v1596_v43 }
 0x181   : > { %2689 = vpow2.f32 %v2421_v41  ;;  %v1719_v46 = vadd.f32 %v3308_v18, %v1594_v44  ;;  %v2678_v47 = vpop.eup %2677 }
 0x182   : > { %2691 = vpow2.f32 %v2389_v42  ;;  %v2680_v48 = vpop.eup %2679  ;;  %v2004_v49 = vadd.f32 1.0, %v2678_v47  ;;  %v2392_v50 = vmul.f32 -1.442695, %v1720_v45 }
 0x183   : > { %v1972_v51 = vadd.f32 1.0, %v2680_v48  ;;  %v2391_v52 = vmul.f32 -1.442695, %v1719_v46  ;;  %v1660_v53 = vpop.xlane.xlu1 %1659 }
 0x184   : > { %v1658_v54 = vpop.xlane.xlu0 %1657  ;;  %2693 = vrcp.f32 %v2004_v49  ;;  %v1752_v55 = vadd.f32 %v3308_v18, %v1660_v53 }
 0x185   : > { %v1751_v56 = vadd.f32 %v3308_v18, %v1658_v54  ;;  %2695 = vrcp.f32 %v1972_v51 }
 0x186   : > { %v2682_v57 = vpop.eup %2681  ;;  %2697 = vpow2.f32 %v2392_v50  ;;  %v2424_v60 = vmul.f32 -1.442695, %v1752_v55 }
 0x187   : > { %v2684_v58 = vpop.eup %2683  ;;  %v1971_v59 = vadd.f32 1.0, %v2682_v57  ;;  %2699 = vpow2.f32 %v2391_v52  ;;  %v2423_v62 = vmul.f32 -1.442695, %v1751_v56  ;;  %v1600_v63 = vpop.xlane.xlu1 %1599 }
 0x188   : > { %v1974_v61 = vadd.f32 1.0, %v2684_v58  ;;  %v1598_v0 = vpop.xlane.xlu0 %1597  ;;  %v1722_v1 = vadd.f32 %v3308_v18, %v1600_v63 }
 0x189   : > { %2701 = vrcp.f32 %v1971_v59  ;;  %v1721_v2 = vadd.f32 %v3308_v18, %v1598_v0 }
 0x18a   : > { %v2686_v3 = vpop.eup %2685  ;;  %2703 = vrcp.f32 %v1974_v61  ;;  %v2394_v6 = vmul.f32 -1.442695, %v1722_v1 }
 0x18b   : > { %v2688_v4 = vpop.eup %2687  ;;  %v2003_v5 = vadd.f32 1.0, %v2686_v3  ;;  %2705 = vpow2.f32 %v2424_v60  ;;  %v2393_v9 = vmul.f32 -1.442695, %v1721_v2  ;;  %v1664_v10 = vpop.xlane.xlu1 %1663 }
 0x18c   : > { %v2006_v7 = vadd.f32 1.0, %v2688_v4  ;;  %2707 = vpow2.f32 %v2423_v62  ;;  %v1662_v11 = vpop.xlane.xlu0 %1661  ;;  %v1754_v12 = vadd.f32 %v3308_v18, %v1664_v10 }
 0x18d   : > { %2709 = vrcp.f32 %v2003_v5  ;;  %v1753_v8 = vadd.f32 %v3308_v18, %v1662_v11 }
 0x18e   : > { %v2690_v13 = vpop.eup %2689  ;;  %2711 = vrcp.f32 %v2006_v7  ;;  %v2426_v16 = vmul.f32 -1.442695, %v1754_v12 }
 0x18f   : > { %v2692_v14 = vpop.eup %2691  ;;  %v2005_v15 = vadd.f32 1.0, %v2690_v13  ;;  %2713 = vpow2.f32 %v2394_v6  ;;  %v2425_v19 = vmul.f32 -1.442695, %v1753_v8  ;;  %v1604_v20 = vpop.xlane.xlu1 %1603 }
 0x190   : > { %v1973_v17 = vadd.f32 1.0, %v2692_v14  ;;  %2715 = vpow2.f32 %v2393_v9  ;;  %v1602_v21 = vpop.xlane.xlu0 %1601  ;;  %v1724_v22 = vadd.f32 %v3308_v18, %v1604_v20 }
 0x191   : > { %2717 = vrcp.f32 %v2005_v15  ;;  %v1723_v23 = vadd.f32 %v3308_v18, %v1602_v21  ;;  %v2694_v25 = vpop.eup %2693 }
 0x192   : > { %2719 = vrcp.f32 %v1973_v17  ;;  %v2696_v26 = vpop.eup %2695  ;;  %2197 = vst.msk [vmem:[%s3331_s29 + $0x108] sm:$0xff] %vm2163_vm1, %v2694_v25  ;;  %v2396_v27 = vmul.f32 -1.442695, %v1724_v22 }
 0x193   : > { %2721 = vpow2.f32 %v2426_v16  ;;  %v2395_v28 = vmul.f32 -1.442695, %v1723_v23  ;;  %v2698_v24 = vpop.eup %2697  ;;  %2165 = vst.msk [vmem:[%s3331_s29 + $0x8] sm:$0xff] %vm2163_vm1, %v2696_v26  ;;  %v1668_v29 = vpop.xlane.xlu1 %1667 }
 0x194   : > { %2723 = vpow2.f32 %v2425_v19  ;;  %v1666_v30 = vpop.xlane.xlu0 %1665  ;;  %v2700_v31 = vpop.eup %2699  ;;  %v1976_v32 = vadd.f32 1.0, %v2698_v24  ;;  %v1756_v33 = vadd.f32 %v3308_v18, %v1668_v29 }
 0x195   : > { %2725 = vpow2.f32 %v2396_v27  ;;  %v1755_v34 = vadd.f32 %v3308_v18, %v1666_v30  ;;  %v1975_v36 = vadd.f32 1.0, %v2700_v31 }
 0x196   : > { %v2702_v35 = vpop.eup %2701  ;;  %2727 = vpow2.f32 %v2395_v28  ;;  %v2428_v38 = vmul.f32 -1.442695, %v1756_v33 }
 0x197   : > { %v2704_v37 = vpop.eup %2703  ;;  %2164 = vst.msk [vmem:[%s3331_s29] sm:$0xff] %vm2163_vm1, %v2702_v35  ;;  %2729 = vrcp.f32 %v1976_v32  ;;  %v2427_v39 = vmul.f32 -1.442695, %v1755_v34  ;;  %v1608_v41 = vpop.xlane.xlu1 %1607 }
 0x198   : > { %v2706_v40 = vpop.eup %2705  ;;  %2167 = vst.msk [vmem:[%s3331_s29 + $0x18] sm:$0xff] %vm2163_vm1, %v2704_v37  ;;  %2731 = vrcp.f32 %v1975_v36  ;;  %v1606_v42 = vpop.xlane.xlu0 %1605  ;;  %v1726_v45 = vadd.f32 %v3308_v18, %v1608_v41 }
 0x199   : > { %v2708_v43 = vpop.eup %2707  ;;  %v2008_v44 = vadd.f32 1.0, %v2706_v40  ;;  %2733 = vpow2.f32 %v2428_v38  ;;  %v1725_v46 = vadd.f32 %v3308_v18, %v1606_v42 }
 0x19a   : > { %v2710_v47 = vpop.eup %2709  ;;  %v2007_v48 = vadd.f32 1.0, %v2708_v43  ;;  %2735 = vpow2.f32 %v2427_v39  ;;  %v2398_v50 = vmul.f32 -1.442695, %v1726_v45 }
 0x19b   : > { %v2712_v49 = vpop.eup %2711  ;;  %2196 = vst.msk [vmem:[%s3331_s29 + $0x100] sm:$0xff] %vm2163_vm1, %v2710_v47  ;;  %2737 = vrcp.f32 %v2008_v44  ;;  %v2397_v51 = vmul.f32 -1.442695, %v1725_v46  ;;  %v1672_v53 = vpop.xlane.xlu1 %1671 }
 0x19c   : > { %v2714_v52 = vpop.eup %2713  ;;  %2199 = vst.msk [vmem:[%s3331_s29 + $0x118] sm:$0xff] %vm2163_vm1, %v2712_v49  ;;  %2739 = vrcp.f32 %v2007_v48  ;;  %v1670_v54 = vpop.xlane.xlu0 %1669  ;;  %v1758_v57 = vadd.f32 %v3308_v18, %v1672_v53 }
 0x19d   : > { %v2716_v55 = vpop.eup %2715  ;;  %v1978_v56 = vadd.f32 1.0, %v2714_v52  ;;  %2741 = vpow2.f32 %v2398_v50  ;;  %v1757_v58 = vadd.f32 %v3308_v18, %v1670_v54 }
 0x19e   : > { %v2718_v59 = vpop.eup %2717  ;;  %v1977_v60 = vadd.f32 1.0, %v2716_v55  ;;  %2743 = vpow2.f32 %v2397_v51  ;;  %v2430_v62 = vmul.f32 -1.442695, %v1758_v57 }
 0x19f   : > { %v2720_v61 = vpop.eup %2719  ;;  %2198 = vst.msk [vmem:[%s3331_s29 + $0x110] sm:$0xff] %vm2163_vm1, %v2718_v59  ;;  %2745 = vrcp.f32 %v1978_v56  ;;  %v2429_v63 = vmul.f32 -1.442695, %v1757_v58  ;;  %v1612_v1 = vpop.xlane.xlu1 %1611 }
 0x1a0   : > { %v2722_v0 = vpop.eup %2721  ;;  %2166 = vst.msk [vmem:[%s3331_s29 + $0x10] sm:$0xff] %vm2163_vm1, %v2720_v61  ;;  %2747 = vrcp.f32 %v1977_v60  ;;  %v1610_v2 = vpop.xlane.xlu0 %1609  ;;  %v1728_v5 = vadd.f32 %v3308_v18, %v1612_v1 }
 0x1a1   : > { %v2724_v3 = vpop.eup %2723  ;;  %v2010_v4 = vadd.f32 1.0, %v2722_v0  ;;  %2749 = vpow2.f32 %v2430_v62  ;;  %v1727_v6 = vadd.f32 %v3308_v18, %v1610_v2 }
 0x1a2   : > { %v2726_v7 = vpop.eup %2725  ;;  %v2009_v9 = vadd.f32 1.0, %v2724_v3  ;;  %2751 = vpow2.f32 %v2429_v63  ;;  %v2400_v12 = vmul.f32 -1.442695, %v1728_v5 }
 0x1a3   : > { %v2728_v10 = vpop.eup %2727  ;;  %2753 = vrcp.f32 %v2010_v4  ;;  %v1980_v11 = vadd.f32 1.0, %v2726_v7  ;;  %v2399_v14 = vmul.f32 -1.442695, %v1727_v6  ;;  %v1676_v15 = vpop.xlane.xlu1 %1675 }
 0x1a4   : > { %v2730_v8 = vpop.eup %2729  ;;  %2755 = vrcp.f32 %v2009_v9  ;;  %v1979_v13 = vadd.f32 1.0, %v2728_v10  ;;  %v1674_v16 = vpop.xlane.xlu0 %1673  ;;  %v1760_v19 = vadd.f32 %v3308_v18, %v1676_v15 }
 0x1a5   : > { %v2732_v17 = vpop.eup %2731  ;;  %2169 = vst.msk [vmem:[%s3331_s29 + $0x28] sm:$0xff] %vm2163_vm1, %v2730_v8  ;;  %2757 = vrcp.f32 %v1980_v11  ;;  %v1759_v20 = vadd.f32 %v3308_v18, %v1674_v16 }
 0x1a6   : > { %v2734_v21 = vpop.eup %2733  ;;  %2168 = vst.msk [vmem:[%s3331_s29 + $0x20] sm:$0xff] %vm2163_vm1, %v2732_v17  ;;  %2759 = vrcp.f32 %v1979_v13  ;;  %v2432_v25 = vmul.f32 -1.442695, %v1760_v19 }
 0x1a7   : > { %v2736_v22 = vpop.eup %2735  ;;  %v2012_v23 = vadd.f32 1.0, %v2734_v21  ;;  %2761 = vpow2.f32 %v2400_v12  ;;  %v2431_v28 = vmul.f32 -1.442695, %v1759_v20  ;;  %v1616_v24 = vpop.xlane.xlu1 %1615 }
 0x1a8   : > { %v2738_v26 = vpop.eup %2737  ;;  %v2011_v27 = vadd.f32 1.0, %v2736_v22  ;;  %2763 = vpow2.f32 %v2399_v14  ;;  %v1614_v29 = vpop.xlane.xlu0 %1613  ;;  %v1730_v31 = vadd.f32 %v3308_v18, %v1616_v24 }
 0x1a9   : > { %v2740_v30 = vpop.eup %2739  ;;  %2201 = vst.msk [vmem:[%s3331_s29 + $0x128] sm:$0xff] %vm2163_vm1, %v2738_v26  ;;  %2765 = vrcp.f32 %v2012_v23  ;;  %v1729_v32 = vadd.f32 %v3308_v18, %v1614_v29 }
 0x1aa   : > { %v2742_v33 = vpop.eup %2741  ;;  %2200 = vst.msk [vmem:[%s3331_s29 + $0x120] sm:$0xff] %vm2163_vm1, %v2740_v30  ;;  %2767 = vrcp.f32 %v2011_v27  ;;  %v2402_v36 = vmul.f32 -1.442695, %v1730_v31 }
 0x1ab   : > { %v2744_v34 = vpop.eup %2743  ;;  %v1982_v35 = vadd.f32 1.0, %v2742_v33  ;;  %2769 = vpow2.f32 %v2432_v25  ;;  %v2401_v39 = vmul.f32 -1.442695, %v1729_v32  ;;  %v1680_v40 = vpop.xlane.xlu1 %1679 }
 0x1ac   : > { %v2746_v37 = vpop.eup %2745  ;;  %v1981_v38 = vadd.f32 1.0, %v2744_v34  ;;  %2771 = vpow2.f32 %v2431_v28  ;;  %v1678_v41 = vpop.xlane.xlu0 %1677  ;;  %v1762_v43 = vadd.f32 %v3308_v18, %v1680_v40 }
 0x1ad   : > { %v2748_v42 = vpop.eup %2747  ;;  %2171 = vst.msk [vmem:[%s3331_s29 + $0x38] sm:$0xff] %vm2163_vm1, %v2746_v37  ;;  %2773 = vrcp.f32 %v1982_v35  ;;  %v1761_v44 = vadd.f32 %v3308_v18, %v1678_v41 }
 0x1ae   : > { %v2750_v45 = vpop.eup %2749  ;;  %2170 = vst.msk [vmem:[%s3331_s29 + $0x30] sm:$0xff] %vm2163_vm1, %v2748_v42  ;;  %2775 = vrcp.f32 %v1981_v38  ;;  %v2434_v48 = vmul.f32 -1.442695, %v1762_v43 }
 0x1af   : > { %v2752_v46 = vpop.eup %2751  ;;  %v2014_v47 = vadd.f32 1.0, %v2750_v45  ;;  %2777 = vpow2.f32 %v2402_v36  ;;  %v2433_v51 = vmul.f32 -1.442695, %v1761_v44  ;;  %v1620_v52 = vpop.xlane.xlu1 %1619 }
 0x1b0   : > { %v2754_v49 = vpop.eup %2753  ;;  %v2013_v50 = vadd.f32 1.0, %v2752_v46  ;;  %2779 = vpow2.f32 %v2401_v39  ;;  %v1618_v53 = vpop.xlane.xlu0 %1617  ;;  %v1732_v55 = vadd.f32 %v3308_v18, %v1620_v52 }
 0x1b1   : > { %v2756_v54 = vpop.eup %2755  ;;  %2203 = vst.msk [vmem:[%s3331_s29 + $0x138] sm:$0xff] %vm2163_vm1, %v2754_v49  ;;  %2781 = vrcp.f32 %v2014_v47  ;;  %v1731_v56 = vadd.f32 %v3308_v18, %v1618_v53 }
 0x1b2   : > { %v2758_v57 = vpop.eup %2757  ;;  %2202 = vst.msk [vmem:[%s3331_s29 + $0x130] sm:$0xff] %vm2163_vm1, %v2756_v54  ;;  %2783 = vrcp.f32 %v2013_v50  ;;  %v2404_v59 = vmul.f32 -1.442695, %v1732_v55 }
 0x1b3   : > { %v2760_v58 = vpop.eup %2759  ;;  %2173 = vst.msk [vmem:[%s3331_s29 + $0x48] sm:$0xff] %vm2163_vm1, %v2758_v57  ;;  %2785 = vpow2.f32 %v2434_v48  ;;  %v2403_v60 = vmul.f32 -1.442695, %v1731_v56  ;;  %v1684_v62 = vpop.xlane.xlu1 %1683 }
 0x1b4   : > { %v2762_v61 = vpop.eup %2761  ;;  %2172 = vst.msk [vmem:[%s3331_s29 + $0x40] sm:$0xff] %vm2163_vm1, %v2760_v58  ;;  %2787 = vpow2.f32 %v2433_v51  ;;  %v1682_v63 = vpop.xlane.xlu0 %1681  ;;  %v1764_v2 = vadd.f32 %v3308_v18, %v1684_v62 }
 0x1b5   : > { %v2764_v0 = vpop.eup %2763  ;;  %v1984_v1 = vadd.f32 1.0, %v2762_v61  ;;  %2789 = vpow2.f32 %v2404_v59  ;;  %v1763_v3 = vadd.f32 %v3308_v18, %v1682_v63 }
 0x1b6   : > { %v2766_v4 = vpop.eup %2765  ;;  %v1983_v5 = vadd.f32 1.0, %v2764_v0  ;;  %2791 = vpow2.f32 %v2403_v60  ;;  %v2436_v7 = vmul.f32 -1.442695, %v1764_v2 }
 0x1b7   : > { %v2768_v6 = vpop.eup %2767  ;;  %2205 = vst.msk [vmem:[%s3331_s29 + $0x148] sm:$0xff] %vm2163_vm1, %v2766_v4  ;;  %2793 = vrcp.f32 %v1984_v1  ;;  %v2435_v9 = vmul.f32 -1.442695, %v1763_v3  ;;  %v1624_v11 = vpop.xlane.xlu1 %1623 }
 0x1b8   : > { %v2770_v10 = vpop.eup %2769  ;;  %2204 = vst.msk [vmem:[%s3331_s29 + $0x140] sm:$0xff] %vm2163_vm1, %v2768_v6  ;;  %2795 = vrcp.f32 %v1983_v5  ;;  %v1622_v12 = vpop.xlane.xlu0 %1621  ;;  %v1734_v14 = vadd.f32 %v3308_v18, %v1624_v11 }
 0x1b9   : > { %v2772_v8 = vpop.eup %2771  ;;  %v2016_v13 = vadd.f32 1.0, %v2770_v10  ;;  %2797 = vpow2.f32 %v2436_v7  ;;  %v1733_v15 = vadd.f32 %v3308_v18, %v1622_v12 }
 0x1ba   : > { %v2774_v16 = vpop.eup %2773  ;;  %v2015_v17 = vadd.f32 1.0, %v2772_v8  ;;  %2799 = vpow2.f32 %v2435_v9  ;;  %v2406_v20 = vmul.f32 -1.442695, %v1734_v14 }
 0x1bb   : > { %v2776_v19 = vpop.eup %2775  ;;  %2175 = vst.msk [vmem:[%s3331_s29 + $0x58] sm:$0xff] %vm2163_vm1, %v2774_v16  ;;  %2801 = vrcp.f32 %v2016_v13  ;;  %v2405_v21 = vmul.f32 -1.442695, %v1733_v15  ;;  %v1688_v23 = vpop.xlane.xlu1 %1687 }
 0x1bc   : > { %v2778_v22 = vpop.eup %2777  ;;  %2174 = vst.msk [vmem:[%s3331_s29 + $0x50] sm:$0xff] %vm2163_vm1, %v2776_v19  ;;  %2803 = vrcp.f32 %v2015_v17  ;;  %v1686_v25 = vpop.xlane.xlu0 %1685  ;;  %v1766_v28 = vadd.f32 %v3308_v18, %v1688_v23 }
 0x1bd   : > { %v2780_v26 = vpop.eup %2779  ;;  %v1986_v27 = vadd.f32 1.0, %v2778_v22  ;;  %2805 = vpow2.f32 %v2406_v20  ;;  %v1765_v24 = vadd.f32 %v3308_v18, %v1686_v25 }
 0x1be   : > { %v2782_v29 = vpop.eup %2781  ;;  %v1985_v30 = vadd.f32 1.0, %v2780_v26  ;;  %2807 = vpow2.f32 %v2405_v21  ;;  %v2438_v32 = vmul.f32 -1.442695, %v1766_v28 }
 0x1bf   : > { %v2784_v31 = vpop.eup %2783  ;;  %2207 = vst.msk [vmem:[%s3331_s29 + $0x158] sm:$0xff] %vm2163_vm1, %v2782_v29  ;;  %2809 = vrcp.f32 %v1986_v27  ;;  %v2437_v33 = vmul.f32 -1.442695, %v1765_v24  ;;  %v1628_v35 = vpop.xlane.xlu1 %1627 }
 0x1c0   : > { %v2786_v34 = vpop.eup %2785  ;;  %2206 = vst.msk [vmem:[%s3331_s29 + $0x150] sm:$0xff] %vm2163_vm1, %v2784_v31  ;;  %2811 = vrcp.f32 %v1985_v30  ;;  %v1626_v36 = vpop.xlane.xlu0 %1625  ;;  %v1736_v39 = vadd.f32 %v3308_v18, %v1628_v35 }
 0x1c1   : > { %v2788_v37 = vpop.eup %2787  ;;  %v2018_v38 = vadd.f32 1.0, %v2786_v34  ;;  %2813 = vpow2.f32 %v2438_v32  ;;  %v1735_v40 = vadd.f32 %v3308_v18, %v1626_v36 }
 0x1c2   : > { %v2790_v41 = vpop.eup %2789  ;;  %v2017_v42 = vadd.f32 1.0, %v2788_v37  ;;  %2815 = vpow2.f32 %v2437_v33  ;;  %v2408_v45 = vmul.f32 -1.442695, %v1736_v39 }
 0x1c3   : > { %v2792_v43 = vpop.eup %2791  ;;  %2817 = vrcp.f32 %v2018_v38  ;;  %v1988_v44 = vadd.f32 1.0, %v2790_v41  ;;  %v2407_v48 = vmul.f32 -1.442695, %v1735_v40  ;;  %v1692_v49 = vpop.xlane.xlu1 %1691 }
 0x1c4   : > { %v2794_v46 = vpop.eup %2793  ;;  %2819 = vrcp.f32 %v2017_v42  ;;  %v1987_v47 = vadd.f32 1.0, %v2792_v43  ;;  %v1690_v50 = vpop.xlane.xlu0 %1689  ;;  %v1768_v52 = vadd.f32 %v3308_v18, %v1692_v49 }
 0x1c5   : > { %v2796_v51 = vpop.eup %2795  ;;  %2177 = vst.msk [vmem:[%s3331_s29 + $0x68] sm:$0xff] %vm2163_vm1, %v2794_v46  ;;  %2821 = vrcp.f32 %v1988_v44  ;;  %v1767_v53 = vadd.f32 %v3308_v18, %v1690_v50 }
 0x1c6   : > { %v2798_v54 = vpop.eup %2797  ;;  %2176 = vst.msk [vmem:[%s3331_s29 + $0x60] sm:$0xff] %vm2163_vm1, %v2796_v51  ;;  %2823 = vrcp.f32 %v1987_v47  ;;  %v2440_v57 = vmul.f32 -1.442695, %v1768_v52 }
 0x1c7   : > { %v2800_v55 = vpop.eup %2799  ;;  %v2020_v56 = vadd.f32 1.0, %v2798_v54  ;;  %2825 = vpow2.f32 %v2408_v45  ;;  %v2439_v60 = vmul.f32 -1.442695, %v1767_v53  ;;  %v1632_v61 = vpop.xlane.xlu1 %1631 }
 0x1c8   : > { %v2802_v58 = vpop.eup %2801  ;;  %v2019_v59 = vadd.f32 1.0, %v2800_v55  ;;  %2827 = vpow2.f32 %v2407_v48  ;;  %v1630_v62 = vpop.xlane.xlu0 %1629  ;;  %v1738_v0 = vadd.f32 %v3308_v18, %v1632_v61 }
 0x1c9   : > { %v2804_v63 = vpop.eup %2803  ;;  %2209 = vst.msk [vmem:[%s3331_s29 + $0x168] sm:$0xff] %vm2163_vm1, %v2802_v58  ;;  %2829 = vrcp.f32 %v2020_v56  ;;  %v1737_v1 = vadd.f32 %v3308_v18, %v1630_v62 }
 0x1ca   : > { %v2806_v2 = vpop.eup %2805  ;;  %2208 = vst.msk [vmem:[%s3331_s29 + $0x160] sm:$0xff] %vm2163_vm1, %v2804_v63  ;;  %2831 = vrcp.f32 %v2019_v59  ;;  %v2410_v5 = vmul.f32 -1.442695, %v1738_v0 }
 0x1cb   : > { %v2808_v3 = vpop.eup %2807  ;;  %v1990_v4 = vadd.f32 1.0, %v2806_v2  ;;  %2833 = vpow2.f32 %v2440_v57  ;;  %v2409_v9 = vmul.f32 -1.442695, %v1737_v1  ;;  %v1696_v10 = vpop.xlane.xlu1 %1695 }
 0x1cc   : > { %v2810_v6 = vpop.eup %2809  ;;  %v1989_v7 = vadd.f32 1.0, %v2808_v3  ;;  %2835 = vpow2.f32 %v2439_v60  ;;  %v1694_v11 = vpop.xlane.xlu0 %1693  ;;  %v1770_v8 = vadd.f32 %v3308_v18, %v1696_v10 }
 0x1cd   : > { %v2812_v12 = vpop.eup %2811  ;;  %2179 = vst.msk [vmem:[%s3331_s29 + $0x78] sm:$0xff] %vm2163_vm1, %v2810_v6  ;;  %2837 = vrcp.f32 %v1990_v4  ;;  %v1769_v13 = vadd.f32 %v3308_v18, %v1694_v11 }
 0x1ce   : > { %v2814_v14 = vpop.eup %2813  ;;  %2178 = vst.msk [vmem:[%s3331_s29 + $0x70] sm:$0xff] %vm2163_vm1, %v2812_v12  ;;  %2839 = vrcp.f32 %v1989_v7  ;;  %v2442_v17 = vmul.f32 -1.442695, %v1770_v8 }
 0x1cf   : > { %v2816_v15 = vpop.eup %2815  ;;  %v2022_v16 = vadd.f32 1.0, %v2814_v14  ;;  %2841 = vpow2.f32 %v2410_v5  ;;  %v2441_v21 = vmul.f32 -1.442695, %v1769_v13  ;;  %v1636_v22 = vpop.xlane.xlu1 %1635 }
 0x1d0   : > { %v2818_v19 = vpop.eup %2817  ;;  %v2021_v20 = vadd.f32 1.0, %v2816_v15  ;;  %2843 = vpow2.f32 %v2409_v9  ;;  %v1634_v23 = vpop.xlane.xlu0 %1633  ;;  %v1740_v26 = vadd.f32 %v3308_v18, %v1636_v22 }
 0x1d1   : > { %v2820_v25 = vpop.eup %2819  ;;  %2211 = vst.msk [vmem:[%s3331_s29 + $0x178] sm:$0xff] %vm2163_vm1, %v2818_v19  ;;  %2845 = vrcp.f32 %v2022_v16  ;;  %v1739_v27 = vadd.f32 %v3308_v18, %v1634_v23 }
 0x1d2   : > { %v2822_v28 = vpop.eup %2821  ;;  %2210 = vst.msk [vmem:[%s3331_s29 + $0x170] sm:$0xff] %vm2163_vm1, %v2820_v25  ;;  %2847 = vrcp.f32 %v2021_v20  ;;  %v2412_v29 = vmul.f32 -1.442695, %v1740_v26 }
 0x1d3   : > { %v2824_v24 = vpop.eup %2823  ;;  %2181 = vst.msk [vmem:[%s3331_s29 + $0x88] sm:$0xff] %vm2163_vm1, %v2822_v28  ;;  %2849 = vpow2.f32 %v2442_v17  ;;  %v2411_v30 = vmul.f32 -1.442695, %v1739_v27  ;;  %v1700_v32 = vpop.xlane.xlu1 %1699 }
 0x1d4   : > { %v2826_v31 = vpop.eup %2825  ;;  %2180 = vst.msk [vmem:[%s3331_s29 + $0x80] sm:$0xff] %vm2163_vm1, %v2824_v24  ;;  %2851 = vpow2.f32 %v2441_v21  ;;  %v1698_v33 = vpop.xlane.xlu0 %1697  ;;  %v1772_v36 = vadd.f32 %v3308_v18, %v1700_v32 }
 0x1d5   : > { %v2828_v34 = vpop.eup %2827  ;;  %v1992_v35 = vadd.f32 1.0, %v2826_v31  ;;  %2853 = vpow2.f32 %v2412_v29  ;;  %v1771_v37 = vadd.f32 %v3308_v18, %v1698_v33 }
 0x1d6   : > { %v2830_v38 = vpop.eup %2829  ;;  %v1991_v39 = vadd.f32 1.0, %v2828_v34  ;;  %2855 = vpow2.f32 %v2411_v30  ;;  %v2444_v41 = vmul.f32 -1.442695, %v1772_v36 }
 0x1d7   : > { %v2832_v40 = vpop.eup %2831  ;;  %2213 = vst.msk [vmem:[%s3331_s29 + $0x188] sm:$0xff] %vm2163_vm1, %v2830_v38  ;;  %2857 = vrcp.f32 %v1992_v35  ;;  %v2443_v42 = vmul.f32 -1.442695, %v1771_v37  ;;  %v1640_v44 = vpop.xlane.xlu1 %1639 }
 0x1d8   : > { %v2834_v43 = vpop.eup %2833  ;;  %2212 = vst.msk [vmem:[%s3331_s29 + $0x180] sm:$0xff] %vm2163_vm1, %v2832_v40  ;;  %2859 = vrcp.f32 %v1991_v39  ;;  %v1638_v45 = vpop.xlane.xlu0 %1637  ;;  %v1742_v48 = vadd.f32 %v3308_v18, %v1640_v44 }
 0x1d9   : > { %v2836_v46 = vpop.eup %2835  ;;  %v2024_v47 = vadd.f32 1.0, %v2834_v43  ;;  %2861 = vpow2.f32 %v2444_v41  ;;  %v1741_v49 = vadd.f32 %v3308_v18, %v1638_v45 }
 0x1da   : > { %v2838_v50 = vpop.eup %2837  ;;  %v2023_v51 = vadd.f32 1.0, %v2836_v46  ;;  %2863 = vpow2.f32 %v2443_v42  ;;  %v2414_v53 = vmul.f32 -1.442695, %v1742_v48 }
 0x1db   : > { %v2840_v52 = vpop.eup %2839  ;;  %2183 = vst.msk [vmem:[%s3331_s29 + $0x98] sm:$0xff] %vm2163_vm1, %v2838_v50  ;;  %2865 = vrcp.f32 %v2024_v47  ;;  %v2413_v54 = vmul.f32 -1.442695, %v1741_v49  ;;  %v1704_v56 = vpop.xlane.xlu1 %1703 }
 0x1dc   : > { %v2842_v55 = vpop.eup %2841  ;;  %2182 = vst.msk [vmem:[%s3331_s29 + $0x90] sm:$0xff] %vm2163_vm1, %v2840_v52  ;;  %2867 = vrcp.f32 %v2023_v51  ;;  %v1702_v57 = vpop.xlane.xlu0 %1701  ;;  %v1774_v60 = vadd.f32 %v3308_v18, %v1704_v56 }
 0x1dd   : > { %v2844_v58 = vpop.eup %2843  ;;  %v1994_v59 = vadd.f32 1.0, %v2842_v55  ;;  %2869 = vpow2.f32 %v2414_v53  ;;  %v1773_v61 = vadd.f32 %v3308_v18, %v1702_v57 }
 0x1de   : > { %v2846_v62 = vpop.eup %2845  ;;  %v1993_v63 = vadd.f32 1.0, %v2844_v58  ;;  %2871 = vpow2.f32 %v2413_v54  ;;  %v2446_v1 = vmul.f32 -1.442695, %v1774_v60 }
 0x1df   : > { %v2848_v0 = vpop.eup %2847  ;;  %2215 = vst.msk [vmem:[%s3331_s29 + $0x198] sm:$0xff] %vm2163_vm1, %v2846_v62  ;;  %2873 = vrcp.f32 %v1994_v59  ;;  %v2445_v2 = vmul.f32 -1.442695, %v1773_v61  ;;  %v1644_v4 = vpop.xlane.xlu1 %1643 }
 0x1e0   : > { %v2850_v3 = vpop.eup %2849  ;;  %2214 = vst.msk [vmem:[%s3331_s29 + $0x190] sm:$0xff] %vm2163_vm1, %v2848_v0  ;;  %2875 = vrcp.f32 %v1993_v63  ;;  %v1642_v5 = vpop.xlane.xlu0 %1641  ;;  %v1744_v9 = vadd.f32 %v3308_v18, %v1644_v4 }
 0x1e1   : > { %v2852_v6 = vpop.eup %2851  ;;  %v2026_v7 = vadd.f32 1.0, %v2850_v3  ;;  %2877 = vpow2.f32 %v2446_v1  ;;  %v1743_v10 = vadd.f32 %v3308_v18, %v1642_v5 }
 0x1e2   : > { %v2854_v11 = vpop.eup %2853  ;;  %v2025_v12 = vadd.f32 1.0, %v2852_v6  ;;  %2879 = vpow2.f32 %v2445_v2  ;;  %v2416_v14 = vmul.f32 -1.442695, %v1744_v9 }
 0x1e3   : > { %v2856_v8 = vpop.eup %2855  ;;  %2881 = vrcp.f32 %v2026_v7  ;;  %v1996_v13 = vadd.f32 1.0, %v2854_v11  ;;  %v2415_v17 = vmul.f32 -1.442695, %v1743_v10  ;;  %v1708_v19 = vpop.xlane.xlu1 %1707 }
 0x1e4   : > { %v2858_v15 = vpop.eup %2857  ;;  %2883 = vrcp.f32 %v2025_v12  ;;  %v1995_v16 = vadd.f32 1.0, %v2856_v8  ;;  %v1706_v20 = vpop.xlane.xlu0 %1705  ;;  %v1776_v22 = vadd.f32 %v3308_v18, %v1708_v19 }
 0x1e5   : > { %v2860_v21 = vpop.eup %2859  ;;  %2185 = vst.msk [vmem:[%s3331_s29 + $0xa8] sm:$0xff] %vm2163_vm1, %v2858_v15  ;;  %2885 = vrcp.f32 %v1996_v13  ;;  %v1775_v23 = vadd.f32 %v3308_v18, %v1706_v20 }
 0x1e6   : > { %v2862_v25 = vpop.eup %2861  ;;  %2184 = vst.msk [vmem:[%s3331_s29 + $0xa0] sm:$0xff] %vm2163_vm1, %v2860_v21  ;;  %2887 = vrcp.f32 %v1995_v16  ;;  %v2448_v28 = vmul.f32 -1.442695, %v1776_v22 }
 0x1e7   : > { %v2864_v26 = vpop.eup %2863  ;;  %v2028_v27 = vadd.f32 1.0, %v2862_v25  ;;  %2889 = vpow2.f32 %v2416_v14  ;;  %v2447_v30 = vmul.f32 -1.442695, %v1775_v23  ;;  %v1648_v31 = vpop.xlane.xlu1 %1647 }
 0x1e8   : > { %v2866_v24 = vpop.eup %2865  ;;  %v2027_v29 = vadd.f32 1.0, %v2864_v26  ;;  %2891 = vpow2.f32 %v2415_v17  ;;  %v1646_v32 = vpop.xlane.xlu0 %1645  ;;  %v1746_v34 = vadd.f32 %v3308_v18, %v1648_v31 }
 0x1e9   : > { %v2868_v33 = vpop.eup %2867  ;;  %2217 = vst.msk [vmem:[%s3331_s29 + $0x1a8] sm:$0xff] %vm2163_vm1, %v2866_v24  ;;  %2893 = vrcp.f32 %v2028_v27  ;;  %v1745_v35 = vadd.f32 %v3308_v18, %v1646_v32 }
 0x1ea   : > { %v2870_v36 = vpop.eup %2869  ;;  %2216 = vst.msk [vmem:[%s3331_s29 + $0x1a0] sm:$0xff] %vm2163_vm1, %v2868_v33  ;;  %2895 = vrcp.f32 %v2027_v29  ;;  %v2418_v39 = vmul.f32 -1.442695, %v1746_v34 }
 0x1eb   : > { %v2872_v37 = vpop.eup %2871  ;;  %v1998_v38 = vadd.f32 1.0, %v2870_v36  ;;  %2897 = vpow2.f32 %v2448_v28  ;;  %v2417_v42 = vmul.f32 -1.442695, %v1745_v35  ;;  %v1712_v43 = vpop.xlane.xlu1 %1711 }
 0x1ec   : > { %v2874_v40 = vpop.eup %2873  ;;  %v1997_v41 = vadd.f32 1.0, %v2872_v37  ;;  %2899 = vpow2.f32 %v2447_v30  ;;  %v1710_v44 = vpop.xlane.xlu0 %1709  ;;  %v1778_v46 = vadd.f32 %v3308_v18, %v1712_v43 }
 0x1ed   : > { %v2876_v45 = vpop.eup %2875  ;;  %2187 = vst.msk [vmem:[%s3331_s29 + $0xb8] sm:$0xff] %vm2163_vm1, %v2874_v40  ;;  %2901 = vrcp.f32 %v1998_v38  ;;  %v1777_v47 = vadd.f32 %v3308_v18, %v1710_v44 }
 0x1ee   : > { %v2878_v48 = vpop.eup %2877  ;;  %2186 = vst.msk [vmem:[%s3331_s29 + $0xb0] sm:$0xff] %vm2163_vm1, %v2876_v45  ;;  %2903 = vrcp.f32 %v1997_v41  ;;  %v2450_v51 = vmul.f32 -1.442695, %v1778_v46 }
 0x1ef   : > { %v2880_v49 = vpop.eup %2879  ;;  %v2030_v50 = vadd.f32 1.0, %v2878_v48  ;;  %2905 = vpow2.f32 %v2418_v39  ;;  %v2449_v54 = vmul.f32 -1.442695, %v1777_v47 }
 0x1f0   : > { %v2882_v52 = vpop.eup %2881  ;;  %v2029_v53 = vadd.f32 1.0, %v2880_v49  ;;  %2907 = vpow2.f32 %v2417_v42 }
 0x1f1   : > { %v2884_v55 = vpop.eup %2883  ;;  %2219 = vst.msk [vmem:[%s3331_s29 + $0x1b8] sm:$0xff] %vm2163_vm1, %v2882_v52  ;;  %2909 = vrcp.f32 %v2030_v50 }
 0x1f2   : > { %v2886_v18 = vpop.eup %2885  ;;  %2218 = vst.msk [vmem:[%s3331_s29 + $0x1b0] sm:$0xff] %vm2163_vm1, %v2884_v55  ;;  %2911 = vrcp.f32 %v2029_v53 }
 0x1f3   : > { %v2888_v56 = vpop.eup %2887  ;;  %2189 = vst.msk [vmem:[%s3331_s29 + $0xc8] sm:$0xff] %vm2163_vm1, %v2886_v18  ;;  %2913 = vpow2.f32 %v2450_v51 }
 0x1f4   : > { %v2890_v57 = vpop.eup %2889  ;;  %2188 = vst.msk [vmem:[%s3331_s29 + $0xc0] sm:$0xff] %vm2163_vm1, %v2888_v56  ;;  %2915 = vpow2.f32 %v2449_v54 }
 0x1f5   : > { %v2892_v58 = vpop.eup %2891  ;;  %v2000_v59 = vadd.f32 1.0, %v2890_v57 }
 0x1f6   : > { %v2894_v60 = vpop.eup %2893  ;;  %v1999_v61 = vadd.f32 1.0, %v2892_v58 }
 0x1f7   : > { %v2896_v62 = vpop.eup %2895  ;;  %2221 = vst.msk [vmem:[%s3331_s29 + $0x1c8] sm:$0xff] %vm2163_vm1, %v2894_v60  ;;  %2917 = vrcp.f32 %v2000_v59 }
 0x1f8   : > { %v2898_v63 = vpop.eup %2897  ;;  %2220 = vst.msk [vmem:[%s3331_s29 + $0x1c0] sm:$0xff] %vm2163_vm1, %v2896_v62  ;;  %2919 = vrcp.f32 %v1999_v61 }
 0x1f9   : > { %v2900_v0 = vpop.eup %2899  ;;  %v2032_v1 = vadd.f32 1.0, %v2898_v63 }
 0x1fa   : > { %v2902_v2 = vpop.eup %2901  ;;  %v2031_v3 = vadd.f32 1.0, %v2900_v0 }
 0x1fb   : > { %v2904_v4 = vpop.eup %2903  ;;  %2191 = vst.msk [vmem:[%s3331_s29 + $0xd8] sm:$0xff] %vm2163_vm1, %v2902_v2  ;;  %2921 = vrcp.f32 %v2032_v1 }
 0x1fc   : > { %v2906_v5 = vpop.eup %2905  ;;  %2190 = vst.msk [vmem:[%s3331_s29 + $0xd0] sm:$0xff] %vm2163_vm1, %v2904_v4  ;;  %2923 = vrcp.f32 %v2031_v3 }
 0x1fd   : > { %v2908_v6 = vpop.eup %2907  ;;  %v2002_v7 = vadd.f32 1.0, %v2906_v5 }
 0x1fe   : > { %v2910_v9 = vpop.eup %2909  ;;  %v2001_v10 = vadd.f32 1.0, %v2908_v6 }
 0x1ff   : > { %v2912_v11 = vpop.eup %2911  ;;  %2223 = vst.msk [vmem:[%s3331_s29 + $0x1d8] sm:$0xff] %vm2163_vm1, %v2910_v9  ;;  %2925 = vrcp.f32 %v2002_v7 }
 0x200   : > { %v2914_v12 = vpop.eup %2913  ;;  %2222 = vst.msk [vmem:[%s3331_s29 + $0x1d0] sm:$0xff] %vm2163_vm1, %v2912_v11  ;;  %2927 = vrcp.f32 %v2001_v10 }
 0x201   : > { %v2916_v8 = vpop.eup %2915  ;;  %v2034_v13 = vadd.f32 1.0, %v2914_v12 }
 0x202   : > { %v2033_v14 = vadd.f32 1.0, %v2916_v8 }
 0x203   : > { %2929 = vrcp.f32 %v2034_v13 }
 0x204   : > { %v2918_v15 = vpop.eup %2917  ;;  %2931 = vrcp.f32 %v2033_v14 }
 0x205   : > { %v2920_v16 = vpop.eup %2919  ;;  %2193 = vst.msk [vmem:[%s3331_s29 + $0xe8] sm:$0xff] %vm2163_vm1, %v2918_v15 }
 0x206   : > { %2192 = vst.msk [vmem:[%s3331_s29 + $0xe0] sm:$0xff] %vm2163_vm1, %v2920_v16 }
 0x208   : > { %v2922_v17 = vpop.eup %2921 }
 0x209   : > { %v2924_v19 = vpop.eup %2923  ;;  %2225 = vst.msk [vmem:[%s3331_s29 + $0x1e8] sm:$0xff] %vm2163_vm1, %v2922_v17 }
 0x20a   : > { %2224 = vst.msk [vmem:[%s3331_s29 + $0x1e0] sm:$0xff] %vm2163_vm1, %v2924_v19 }
 0x20c   : > { %v2926_v20 = vpop.eup %2925 }
 0x20d   : > { %v2928_v21 = vpop.eup %2927  ;;  %2195 = vst.msk [vmem:[%s3331_s29 + $0xf8] sm:$0xff] %vm2163_vm1, %v2926_v20 }
 0x20e   : > { %2194 = vst.msk [vmem:[%s3331_s29 + $0xf0] sm:$0xff] %vm2163_vm1, %v2928_v21 }
 0x210   : > { %v2930_v22 = vpop.eup %2929 }
 0x211   : > { %v2932_v23 = vpop.eup %2931  ;;  %2227 = vst.msk [vmem:[%s3331_s29 + $0x1f8] sm:$0xff] %vm2163_vm1, %v2930_v22 }
 0x212   : > { %2226 = vst.msk [vmem:[%s3331_s29 + $0x1f0] sm:$0xff] %vm2163_vm1, %v2932_v23 }
 0x213 PF: > { %s16_s22 = sadd.s32 1, %s2955_s22   ;;  %s3524_s20 = smov %s2951_s21 }
 0x214   : > { %p13_p5 = scmp.ge.s32.totalorder %s16_s22, 6   ;;  %s3525_s21 = smov %s3527_s4 }
 0x216   :  { %15 = sbr.rel (!%p13_p5) target bundleno = 2 (0x2), region = 81 }

</bundles_post_ra>
